<compile_context>
chip_gen: v7x
topology: tpu7x:2x2x1
jax: 0.10.0
libtpu: 0.0.40
codegen_flags: <defaults>
</compile_context>

<pallas_src>
import functools
import math

import jax
import jax.numpy as jnp
from jax.experimental import pallas as pl
from jax.experimental.pallas import tpu as pltpu


def _round_up(x, m):
    return ((x + m - 1) // m) * m


# ----------------------------------------------------------------------------
# Pallas LSTM recurrence kernel (chunked over time)
# ----------------------------------------------------------------------------
def _lstm_chunk_kernel(xp_ref, whh_ref, out_ref, c_out_ref, h_sc, c_sc,
                       *, t_valid, mask_tail, unroll):
    """One grid step == Tc timesteps of the LSTM recurrence.

    xp_ref   : (Tc, Bp, 4*Hp) bf16  precomputed x @ W_ih^T + (b_ih + b_hh)
    whh_ref  : (Hp, 4*Hp)     bf16  W_hh^T (per-gate zero-padded to Hp)
    out_ref  : (Bp, Tc, Hp)   f32   per-step hidden states (batch-major)
    c_out_ref: (Bp, Hp)       f32   final cell state (written on last step)
    h_sc,c_sc: (Bp, Hp)       f32   VMEM scratch carrying state across steps
    t_valid  : static int — number of real (non-padded) timesteps
    mask_tail: static bool — whether padded timesteps exist
    unroll   : static int — fori_loop unroll factor
    """
    step = pl.program_id(0)

    @pl.when(step == 0)
    def _():
        h_sc[...] = jnp.zeros_like(h_sc)
        c_sc[...] = jnp.zeros_like(c_sc)

    Tc = xp_ref.shape[0]
    Hp = h_sc.shape[-1]
    t0 = step * Tc

    # Hoist the grid-invariant recurrent weight load out of the inner loop.
    whh = whh_ref[...]                                   # (Hp, 4Hp) bf16

    def body(t, carry):
        h_prev, c_prev = carry                           # f32 (Bp, Hp)
        # Single MXU push per step: bf16 operands, f32 accumulation.
        gates = xp_ref[t].astype(jnp.float32) + jnp.dot(
            h_prev.astype(jnp.bfloat16), whh,
            preferred_element_type=jnp.float32)          # (Bp, 4Hp) f32

        # PyTorch gate order i, f, g, o; slices are 128-lane aligned.
        i_g = jax.nn.sigmoid(gates[:, 0 * Hp:1 * Hp])
        f_g = jax.nn.sigmoid(gates[:, 1 * Hp:2 * Hp])
        g_g = jnp.tanh(gates[:, 2 * Hp:3 * Hp])
        o_g = jax.nn.sigmoid(gates[:, 3 * Hp:4 * Hp])

        c_new = f_g * c_prev + i_g * g_g
        h_new = o_g * jnp.tanh(c_new)

        if mask_tail:
            # Padded timesteps must not advance the state (final h/c correctness).
            valid = (t0 + t) < t_valid
            h_new = jnp.where(valid, h_new, h_prev)
            c_new = jnp.where(valid, c_new, c_prev)

        # Batch-major, lane-dense store (last dim Hp, multiple of 128).
        out_ref[:, t, :] = h_new
        return (h_new, c_new)

    h_fin, c_fin = jax.lax.fori_loop(
        0, Tc, body, (h_sc[...], c_sc[...]), unroll=unroll)

    h_sc[...] = h_fin
    c_sc[...] = c_fin

    @pl.when(step == pl.num_programs(0) - 1)
    def _():
        c_out_ref[...] = c_fin


def lstm_pallas(x_proj, w_hh_p, *, chunk, t_valid, unroll=8):
    """x_proj: (T_pad, Bp, 4*Hp) bf16;  w_hh_p: (Hp, 4*Hp) bf16.

    Returns (outputs (Bp, T_pad, Hp) f32, c_T (Bp, Hp) f32).
    """
    T_pad, Bp, G = x_proj.shape
    Hp = G // 4
    assert T_pad % chunk == 0

    kernel = functools.partial(
        _lstm_chunk_kernel,
        t_valid=t_valid,
        mask_tail=(t_valid != T_pad),
        unroll=min(unroll, chunk),
    )

    grid_spec = pltpu.PrefetchScalarGridSpec(
        num_scalar_prefetch=0,
        grid=(T_pad // chunk,),
        in_specs=[
            pl.BlockSpec((chunk, Bp, G), lambda s: (s, 0, 0)),   # x_proj chunk
            pl.BlockSpec((Hp, G), lambda s: (0, 0)),             # W_hh^T (invariant)
        ],
        out_specs=[
            pl.BlockSpec((Bp, chunk, Hp), lambda s: (0, s, 0)),  # hidden (batch-major)
            pl.BlockSpec((Bp, Hp), lambda s: (0, 0)),            # final cell
        ],
        scratch_shapes=[
            pltpu.VMEM((Bp, Hp), jnp.float32),                   # h carry
            pltpu.VMEM((Bp, Hp), jnp.float32),                   # c carry
        ],
    )

    out_shapes = (
        jax.ShapeDtypeStruct((Bp, T_pad, Hp), jnp.float32),
        jax.ShapeDtypeStruct((Bp, Hp), jnp.float32),
    )

    return pl.pallas_call(
        kernel,
        out_shape=out_shapes,
        grid_spec=grid_spec,
        compiler_params=pltpu.CompilerParams(
            dimension_semantics=("arbitrary",),   # sequential time recurrence
            vmem_limit_bytes=32 * 1024 * 1024,    # explicit, safe on v5e/v6e/v7x
        ),
    )(x_proj, w_hh_p)


# ----------------------------------------------------------------------------
# Encoder forward (embedding gather + hoisted bf16 input projection + Pallas LSTM)
# ----------------------------------------------------------------------------
def encoder_forward(params, x_ids):
    """x_ids: (B, T) int32 token ids.

    Returns (outputs (B,T,H), (hidden (1,B,H), cell (1,B,H))) — same as the
    PyTorch Encoder.forward (nn.LSTM with batch_first=True).
    """
    B, T = x_ids.shape
    E = params["embedding"].shape[1]
    H = params["w_hh"].shape[1]
    Hp = _round_up(H, 128)            # lane-aligned per-gate hidden dim
    Bp = _round_up(B, 8)              # sublane-aligned batch (callers should
                                      # batch more sequences for MXU utilization)
    Tc = min(64, _round_up(T, 8))     # timesteps per grid step
    T_pad = _round_up(T, Tc)          # pad time to a chunk multiple (masked in-kernel)

    # Embedding gather directly in time-major order (XLA glue).
    emb_tbe = jnp.take(params["embedding"], x_ids.T, axis=0)      # (T, B, E)

    # Hoisted, time-parallel input projection on the MXU in bf16, f32 accumulate.
    w_ih_t = params["w_ih"].T                                      # (E, 4H)
    bias = params["b_ih"] + params["b_hh"]                         # (4H,) f32
    x_proj = jnp.dot(emb_tbe.reshape(T * B, E).astype(jnp.bfloat16),
                     w_ih_t.astype(jnp.bfloat16),
                     preferred_element_type=jnp.float32) + bias
    x_proj = x_proj.reshape(T, B, 4, H)
    # Pad: time -> T_pad, batch -> Bp (sublane), per-gate hidden -> Hp (lane).
    x_proj = jnp.pad(
        x_proj, ((0, T_pad - T), (0, Bp - B), (0, 0), (0, Hp - H)))
    # Stream to the kernel in bf16 (halves x_proj HBM<->VMEM traffic).
    x_proj = x_proj.reshape(T_pad, Bp, 4 * Hp).astype(jnp.bfloat16)

    # Recurrent weight, per-gate zero-padded to Hp, in bf16 for the MXU.
    # (No waste when H is already a multiple of 128.)
    w_hh_t = params["w_hh"].T.reshape(H, 4, H)                     # (H, 4, H)
    w_hh_p = jnp.zeros((Hp, 4, Hp), jnp.float32).at[:H, :, :H].set(w_hh_t)
    w_hh_p = w_hh_p.reshape(Hp, 4 * Hp).astype(jnp.bfloat16)

    outputs_bth, c_T = lstm_pallas(x_proj, w_hh_p, chunk=Tc, t_valid=T)

    # Batch-major already — only strip the padding (no transpose round trip).
    outputs = outputs_bth[:B, :T, :H]                              # (B, T, H)
    hidden = outputs_bth[:B, T - 1, :H][None]                      # (1, B, H)
    cell = c_T[:B, :H][None]                                       # (1, B, H)
    return outputs, (hidden, cell)


# ----------------------------------------------------------------------------
# Pure-JAX f32 reference (for correctness check)
# ----------------------------------------------------------------------------
def encoder_ref(params, x_ids):
    embedded = jnp.take(params["embedding"], x_ids, axis=0)        # (B, T, E)
    B, T, E = embedded.shape
    H = params["w_hh"].shape[1]

    def step(carry, x_t):
        h, c = carry
        gates = (x_t @ params["w_ih"].T + h @ params["w_hh"].T
                 + params["b_ih"] + params["b_hh"])
        i, f, g, o = jnp.split(gates, 4, axis=-1)
        i = jax.nn.sigmoid(i)
        f = jax.nn.sigmoid(f)
        g = jnp.tanh(g)
        o = jax.nn.sigmoid(o)
        c = f * c + i * g
        h = o * jnp.tanh(c)
        return (h, c), h

    h0 = jnp.zeros((B, H), jnp.float32)
    c0 = jnp.zeros((B, H), jnp.float32)
    (hT, cT), ys = jax.lax.scan(step, (h0, c0), jnp.swapaxes(embedded, 0, 1))
    return jnp.swapaxes(ys, 0, 1), (hT[None], cT[None])


# ----------------------------------------------------------------------------
# Deterministic parameter init (mimics nn.Embedding / nn.LSTM defaults)
# ----------------------------------------------------------------------------
def init_params(key, vocab_size, embedding_dim, hidden_dim):
    k_emb, k_wih, k_whh, k_bih, k_bhh = jax.random.split(key, 5)
    bound = 1.0 / math.sqrt(hidden_dim)
    return {
        "embedding": jax.random.normal(
            k_emb, (vocab_size, embedding_dim), jnp.float32),
        "w_ih": jax.random.uniform(
            k_wih, (4 * hidden_dim, embedding_dim), jnp.float32, -bound, bound),
        "w_hh": jax.random.uniform(
            k_whh, (4 * hidden_dim, hidden_dim), jnp.float32, -bound, bound),
        "b_ih": jax.random.uniform(
            k_bih, (4 * hidden_dim,), jnp.float32, -bound, bound),
        "b_hh": jax.random.uniform(
            k_bhh, (4 * hidden_dim,), jnp.float32, -bound, bound),
    }


if __name__ == "__main__":
    vocab_size, embedding_dim, hidden_dim = 16, 32, 32
    batch, seq_len = 2, 8

    key = jax.random.PRNGKey(0)
    k_params, k_ids = jax.random.split(key)
    params = init_params(k_params, vocab_size, embedding_dim, hidden_dim)
    x_ids = jax.random.randint(k_ids, (batch, seq_len), 0, vocab_size,
                               dtype=jnp.int32)

    outputs, (hidden, cell) = jax.jit(encoder_forward)(params, x_ids)
    jax.block_until_ready((outputs, hidden, cell))

    # Sanity check vs the pure-f32 reference.  Tolerance is loosened because
    # the input projection, x_proj streaming and recurrent matmul operands are
    # bf16 in the kernel path (rounding compounds slightly over timesteps).
    r_out, (r_h, r_c) = jax.jit(encoder_ref)(params, x_ids)
    assert outputs.shape == (batch, seq_len, hidden_dim)
    assert hidden.shape == (1, batch, hidden_dim)
    assert cell.shape == (1, batch, hidden_dim)
    assert jnp.allclose(outputs, r_out, rtol=3e-2, atol=3e-2)
    assert jnp.allclose(hidden, r_h, rtol=3e-2, atol=3e-2)
    assert jnp.allclose(cell, r_c, rtol=3e-2, atol=3e-2)

    print("KERNEL_OK")
</pallas_src>

<mosaic_0001>
module attributes {stable_mosaic.version = 11 : i64} {
  func.func @_lstm_chunk_kernel(%arg0: i32, %arg1: memref<8x8x512xbf16, #tpu.memory_space<vmem>>, %arg2: memref<128x512xbf16, #tpu.memory_space<vmem>>, %arg3: memref<8x8x128xf32, #tpu.memory_space<vmem>>, %arg4: memref<8x128xf32, #tpu.memory_space<vmem>>, %arg5: memref<8x128xf32, #tpu.memory_space<vmem>>, %arg6: memref<8x128xf32, #tpu.memory_space<vmem>>) attributes {dimension_semantics = [#tpu.dimension_semantics<arbitrary>], iteration_bounds = array<i64: 1>, scalar_prefetch = 0 : i64, scratch_operands = 2 : i64, tpu.core_type = #tpu.core_type<tc>, window_params = [{transform_indices = @transform_0, window_bounds = array<i64: 8, 8, 512>}, {pipeline_mode = #tpu.pipeline_mode<synchronous>, transform_indices = @transform_1, window_bounds = array<i64: 128, 512>}, {transform_indices = @transform_2, window_bounds = array<i64: 8, 8, 128>}, {pipeline_mode = #tpu.pipeline_mode<synchronous>, transform_indices = @transform_3, window_bounds = array<i64: 8, 128>}]} {
    %c0_i32 = arith.constant 0 : i32
    %0 = arith.cmpi eq, %arg0, %c0_i32 : i32
    %1 = arith.extui %0 : i1 to i32
    %c0_i32_0 = arith.constant 0 : i32
    %2 = arith.cmpi ne, %1, %c0_i32_0 : i32
    scf.if %2 {
      %cst_76 = arith.constant 0.000000e+00 : f32
      %299 = vector.broadcast %cst_76 : f32 to vector<8x128xf32>
      %c0_77 = arith.constant 0 : index
      %c0_78 = arith.constant 0 : index
      %300 = vector.load %arg5[%c0_77, %c0_78] : memref<8x128xf32, #tpu.memory_space<vmem>>, vector<8x128xf32>
      tpu.vector_store %arg5[%c0_77, %c0_78], %299 {strides = array<i32>} : memref<8x128xf32, #tpu.memory_space<vmem>>, vector<8x128xf32>,
      %cst_79 = arith.constant 0.000000e+00 : f32
      %301 = vector.broadcast %cst_79 : f32 to vector<8x128xf32>
      %c0_80 = arith.constant 0 : index
      %c0_81 = arith.constant 0 : index
      %302 = vector.load %arg6[%c0_80, %c0_81] : memref<8x128xf32, #tpu.memory_space<vmem>>, vector<8x128xf32>
      tpu.vector_store %arg6[%c0_80, %c0_81], %301 {strides = array<i32>} : memref<8x128xf32, #tpu.memory_space<vmem>>, vector<8x128xf32>,
    } else {
    }
    %c0 = arith.constant 0 : index
    %c0_1 = arith.constant 0 : index
    %3 = vector.load %arg2[%c0, %c0_1] : memref<128x512xbf16, #tpu.memory_space<vmem>>, vector<128x512xbf16>
    %c0_2 = arith.constant 0 : index
    %c0_3 = arith.constant 0 : index
    %4 = vector.load %arg5[%c0_2, %c0_3] : memref<8x128xf32, #tpu.memory_space<vmem>>, vector<8x128xf32>
    %c0_4 = arith.constant 0 : index
    %c0_5 = arith.constant 0 : index
    %5 = vector.load %arg6[%c0_4, %c0_5] : memref<8x128xf32, #tpu.memory_space<vmem>>, vector<8x128xf32>
    %c0_i32_6 = arith.constant 0 : i32
    %6 = arith.index_cast %c0_i32_6 : i32 to index
    %c0_7 = arith.constant 0 : index
    %c0_8 = arith.constant 0 : index
    %7 = vector.load %arg1[%6, %c0_7, %c0_8] : memref<8x8x512xbf16, #tpu.memory_space<vmem>>, vector<1x8x512xbf16>
    %8 = vector.shape_cast %7 : vector<1x8x512xbf16> to vector<8x512xbf16>
    %9 = arith.extf %8 : vector<8x512xbf16> to vector<8x512xf32>
    %10 = arith.truncf %4 : vector<8x128xf32> to vector<8x128xbf16>
    %cst = arith.constant dense<0.000000e+00> : vector<8x512xf32>
    %11 = tpu.matmul %10, %3, %cst {dimension_numbers = #tpu.dot_dimension_numbers<[1], [0], [0], [1], [0, 0, 1, 1], [], []>} : vector<8x128xbf16>, vector<128x512xbf16>, vector<8x512xf32> -> vector<8x512xf32>
    %12 = arith.addf %9, %11 : vector<8x512xf32>
    %13 = vector.extract_strided_slice %12 {offsets = [0, 0], sizes = [8, 128], strides = [1, 1]} : vector<8x512xf32> to vector<8x128xf32>
    %14 = arith.negf %13 : vector<8x128xf32>
    %15 = math.exp %14 : vector<8x128xf32>
    %cst_9 = arith.constant 1.000000e+00 : f32
    %16 = vector.broadcast %cst_9 : f32 to vector<8x128xf32>
    %17 = arith.addf %16, %15 : vector<8x128xf32>
    %18 = arith.divf %16, %17 : vector<8x128xf32>
    %19 = vector.extract_strided_slice %12 {offsets = [0, 128], sizes = [8, 128], strides = [1, 1]} : vector<8x512xf32> to vector<8x128xf32>
    %20 = arith.negf %19 : vector<8x128xf32>
    %21 = math.exp %20 : vector<8x128xf32>
    %cst_10 = arith.constant 1.000000e+00 : f32
    %22 = vector.broadcast %cst_10 : f32 to vector<8x128xf32>
    %23 = arith.addf %22, %21 : vector<8x128xf32>
    %24 = arith.divf %22, %23 : vector<8x128xf32>
    %25 = vector.extract_strided_slice %12 {offsets = [0, 256], sizes = [8, 128], strides = [1, 1]} : vector<8x512xf32> to vector<8x128xf32>
    %26 = math.tanh %25 : vector<8x128xf32>
    %27 = vector.extract_strided_slice %12 {offsets = [0, 384], sizes = [8, 128], strides = [1, 1]} : vector<8x512xf32> to vector<8x128xf32>
    %28 = arith.negf %27 : vector<8x128xf32>
    %29 = math.exp %28 : vector<8x128xf32>
    %cst_11 = arith.constant 1.000000e+00 : f32
    %30 = vector.broadcast %cst_11 : f32 to vector<8x128xf32>
    %31 = arith.addf %30, %29 : vector<8x128xf32>
    %32 = arith.divf %30, %31 : vector<8x128xf32>
    %33 = arith.mulf %24, %5 : vector<8x128xf32>
    %34 = arith.mulf %18, %26 : vector<8x128xf32>
    %35 = arith.addf %33, %34 : vector<8x128xf32>
    %36 = math.tanh %35 : vector<8x128xf32>
    %37 = arith.mulf %32, %36 : vector<8x128xf32>
    %c0_12 = arith.constant 0 : index
    %38 = arith.index_cast %c0_i32_6 : i32 to index
    %c0_13 = arith.constant 0 : index
    %39 = vector.load %arg3[%c0_12, %38, %c0_13] : memref<8x8x128xf32, #tpu.memory_space<vmem>>, vector<8x1x128xf32>
    %40 = vector.shape_cast %39 : vector<8x1x128xf32> to vector<8x128xf32>
    %41 = vector.shape_cast %37 : vector<8x128xf32> to vector<8x1x128xf32>
    tpu.vector_store %arg3[%c0_12, %38, %c0_13], %41 {strides = array<i32>} : memref<8x8x128xf32, #tpu.memory_space<vmem>>, vector<8x1x128xf32>,
    %c1_i32 = arith.constant 1 : i32
    %42 = arith.index_cast %c1_i32 : i32 to index
    %c0_14 = arith.constant 0 : index
    %c0_15 = arith.constant 0 : index
    %43 = vector.load %arg1[%42, %c0_14, %c0_15] : memref<8x8x512xbf16, #tpu.memory_space<vmem>>, vector<1x8x512xbf16>
    %44 = vector.shape_cast %43 : vector<1x8x512xbf16> to vector<8x512xbf16>
    %45 = arith.extf %44 : vector<8x512xbf16> to vector<8x512xf32>
    %46 = arith.truncf %37 : vector<8x128xf32> to vector<8x128xbf16>
    %cst_16 = arith.constant dense<0.000000e+00> : vector<8x512xf32>
    %47 = tpu.matmul %46, %3, %cst_16 {dimension_numbers = #tpu.dot_dimension_numbers<[1], [0], [0], [1], [0, 0, 1, 1], [], []>} : vector<8x128xbf16>, vector<128x512xbf16>, vector<8x512xf32> -> vector<8x512xf32>
    %48 = arith.addf %45, %47 : vector<8x512xf32>
    %49 = vector.extract_strided_slice %48 {offsets = [0, 0], sizes = [8, 128], strides = [1, 1]} : vector<8x512xf32> to vector<8x128xf32>
    %50 = arith.negf %49 : vector<8x128xf32>
    %51 = math.exp %50 : vector<8x128xf32>
    %cst_17 = arith.constant 1.000000e+00 : f32
    %52 = vector.broadcast %cst_17 : f32 to vector<8x128xf32>
    %53 = arith.addf %52, %51 : vector<8x128xf32>
    %54 = arith.divf %52, %53 : vector<8x128xf32>
    %55 = vector.extract_strided_slice %48 {offsets = [0, 128], sizes = [8, 128], strides = [1, 1]} : vector<8x512xf32> to vector<8x128xf32>
    %56 = arith.negf %55 : vector<8x128xf32>
    %57 = math.exp %56 : vector<8x128xf32>
    %cst_18 = arith.constant 1.000000e+00 : f32
    %58 = vector.broadcast %cst_18 : f32 to vector<8x128xf32>
    %59 = arith.addf %58, %57 : vector<8x128xf32>
    %60 = arith.divf %58, %59 : vector<8x128xf32>
    %61 = vector.extract_strided_slice %48 {offsets = [0, 256], sizes = [8, 128], strides = [1, 1]} : vector<8x512xf32> to vector<8x128xf32>
    %62 = math.tanh %61 : vector<8x128xf32>
    %63 = vector.extract_strided_slice %48 {offsets = [0, 384], sizes = [8, 128], strides = [1, 1]} : vector<8x512xf32> to vector<8x128xf32>
    %64 = arith.negf %63 : vector<8x128xf32>
    %65 = math.exp %64 : vector<8x128xf32>
    %cst_19 = arith.constant 1.000000e+00 : f32
    %66 = vector.broadcast %cst_19 : f32 to vector<8x128xf32>
    %67 = arith.addf %66, %65 : vector<8x128xf32>
    %68 = arith.divf %66, %67 : vector<8x128xf32>
    %69 = arith.mulf %60, %35 : vector<8x128xf32>
    %70 = arith.mulf %54, %62 : vector<8x128xf32>
    %71 = arith.addf %69, %70 : vector<8x128xf32>
    %72 = math.tanh %71 : vector<8x128xf32>
    %73 = arith.mulf %68, %72 : vector<8x128xf32>
    %c0_20 = arith.constant 0 : index
    %74 = arith.index_cast %c1_i32 : i32 to index
    %c0_21 = arith.constant 0 : index
    %75 = vector.load %arg3[%c0_20, %74, %c0_21] : memref<8x8x128xf32, #tpu.memory_space<vmem>>, vector<8x1x128xf32>
    %76 = vector.shape_cast %75 : vector<8x1x128xf32> to vector<8x128xf32>
    %77 = vector.shape_cast %73 : vector<8x128xf32> to vector<8x1x128xf32>
    tpu.vector_store %arg3[%c0_20, %74, %c0_21], %77 {strides = array<i32>} : memref<8x8x128xf32, #tpu.memory_space<vmem>>, vector<8x1x128xf32>,
    %c2_i32 = arith.constant 2 : i32
    %78 = arith.index_cast %c2_i32 : i32 to index
    %c0_22 = arith.constant 0 : index
    %c0_23 = arith.constant 0 : index
    %79 = vector.load %arg1[%78, %c0_22, %c0_23] : memref<8x8x512xbf16, #tpu.memory_space<vmem>>, vector<1x8x512xbf16>
    %80 = vector.shape_cast %79 : vector<1x8x512xbf16> to vector<8x512xbf16>
    %81 = arith.extf %80 : vector<8x512xbf16> to vector<8x512xf32>
    %82 = arith.truncf %73 : vector<8x128xf32> to vector<8x128xbf16>
    %cst_24 = arith.constant dense<0.000000e+00> : vector<8x512xf32>
    %83 = tpu.matmul %82, %3, %cst_24 {dimension_numbers = #tpu.dot_dimension_numbers<[1], [0], [0], [1], [0, 0, 1, 1], [], []>} : vector<8x128xbf16>, vector<128x512xbf16>, vector<8x512xf32> -> vector<8x512xf32>
    %84 = arith.addf %81, %83 : vector<8x512xf32>
    %85 = vector.extract_strided_slice %84 {offsets = [0, 0], sizes = [8, 128], strides = [1, 1]} : vector<8x512xf32> to vector<8x128xf32>
    %86 = arith.negf %85 : vector<8x128xf32>
    %87 = math.exp %86 : vector<8x128xf32>
    %cst_25 = arith.constant 1.000000e+00 : f32
    %88 = vector.broadcast %cst_25 : f32 to vector<8x128xf32>
    %89 = arith.addf %88, %87 : vector<8x128xf32>
    %90 = arith.divf %88, %89 : vector<8x128xf32>
    %91 = vector.extract_strided_slice %84 {offsets = [0, 128], sizes = [8, 128], strides = [1, 1]} : vector<8x512xf32> to vector<8x128xf32>
    %92 = arith.negf %91 : vector<8x128xf32>
    %93 = math.exp %92 : vector<8x128xf32>
    %cst_26 = arith.constant 1.000000e+00 : f32
    %94 = vector.broadcast %cst_26 : f32 to vector<8x128xf32>
    %95 = arith.addf %94, %93 : vector<8x128xf32>
    %96 = arith.divf %94, %95 : vector<8x128xf32>
    %97 = vector.extract_strided_slice %84 {offsets = [0, 256], sizes = [8, 128], strides = [1, 1]} : vector<8x512xf32> to vector<8x128xf32>
    %98 = math.tanh %97 : vector<8x128xf32>
    %99 = vector.extract_strided_slice %84 {offsets = [0, 384], sizes = [8, 128], strides = [1, 1]} : vector<8x512xf32> to vector<8x128xf32>
    %100 = arith.negf %99 : vector<8x128xf32>
    %101 = math.exp %100 : vector<8x128xf32>
    %cst_27 = arith.constant 1.000000e+00 : f32
    %102 = vector.broadcast %cst_27 : f32 to vector<8x128xf32>
    %103 = arith.addf %102, %101 : vector<8x128xf32>
    %104 = arith.divf %102, %103 : vector<8x128xf32>
    %105 = arith.mulf %96, %71 : vector<8x128xf32>
    %106 = arith.mulf %90, %98 : vector<8x128xf32>
    %107 = arith.addf %105, %106 : vector<8x128xf32>
    %108 = math.tanh %107 : vector<8x128xf32>
    %109 = arith.mulf %104, %108 : vector<8x128xf32>
    %c0_28 = arith.constant 0 : index
    %110 = arith.index_cast %c2_i32 : i32 to index
    %c0_29 = arith.constant 0 : index
    %111 = vector.load %arg3[%c0_28, %110, %c0_29] : memref<8x8x128xf32, #tpu.memory_space<vmem>>, vector<8x1x128xf32>
    %112 = vector.shape_cast %111 : vector<8x1x128xf32> to vector<8x128xf32>
    %113 = vector.shape_cast %109 : vector<8x128xf32> to vector<8x1x128xf32>
    tpu.vector_store %arg3[%c0_28, %110, %c0_29], %113 {strides = array<i32>} : memref<8x8x128xf32, #tpu.memory_space<vmem>>, vector<8x1x128xf32>,
    %c3_i32 = arith.constant 3 : i32
    %114 = arith.index_cast %c3_i32 : i32 to index
    %c0_30 = arith.constant 0 : index
    %c0_31 = arith.constant 0 : index
    %115 = vector.load %arg1[%114, %c0_30, %c0_31] : memref<8x8x512xbf16, #tpu.memory_space<vmem>>, vector<1x8x512xbf16>
    %116 = vector.shape_cast %115 : vector<1x8x512xbf16> to vector<8x512xbf16>
    %117 = arith.extf %116 : vector<8x512xbf16> to vector<8x512xf32>
    %118 = arith.truncf %109 : vector<8x128xf32> to vector<8x128xbf16>
    %cst_32 = arith.constant dense<0.000000e+00> : vector<8x512xf32>
    %119 = tpu.matmul %118, %3, %cst_32 {dimension_numbers = #tpu.dot_dimension_numbers<[1], [0], [0], [1], [0, 0, 1, 1], [], []>} : vector<8x128xbf16>, vector<128x512xbf16>, vector<8x512xf32> -> vector<8x512xf32>
    %120 = arith.addf %117, %119 : vector<8x512xf32>
    %121 = vector.extract_strided_slice %120 {offsets = [0, 0], sizes = [8, 128], strides = [1, 1]} : vector<8x512xf32> to vector<8x128xf32>
    %122 = arith.negf %121 : vector<8x128xf32>
    %123 = math.exp %122 : vector<8x128xf32>
    %cst_33 = arith.constant 1.000000e+00 : f32
    %124 = vector.broadcast %cst_33 : f32 to vector<8x128xf32>
    %125 = arith.addf %124, %123 : vector<8x128xf32>
    %126 = arith.divf %124, %125 : vector<8x128xf32>
    %127 = vector.extract_strided_slice %120 {offsets = [0, 128], sizes = [8, 128], strides = [1, 1]} : vector<8x512xf32> to vector<8x128xf32>
    %128 = arith.negf %127 : vector<8x128xf32>
    %129 = math.exp %128 : vector<8x128xf32>
    %cst_34 = arith.constant 1.000000e+00 : f32
    %130 = vector.broadcast %cst_34 : f32 to vector<8x128xf32>
    %131 = arith.addf %130, %129 : vector<8x128xf32>
    %132 = arith.divf %130, %131 : vector<8x128xf32>
    %133 = vector.extract_strided_slice %120 {offsets = [0, 256], sizes = [8, 128], strides = [1, 1]} : vector<8x512xf32> to vector<8x128xf32>
    %134 = math.tanh %133 : vector<8x128xf32>
    %135 = vector.extract_strided_slice %120 {offsets = [0, 384], sizes = [8, 128], strides = [1, 1]} : vector<8x512xf32> to vector<8x128xf32>
    %136 = arith.negf %135 : vector<8x128xf32>
    %137 = math.exp %136 : vector<8x128xf32>
    %cst_35 = arith.constant 1.000000e+00 : f32
    %138 = vector.broadcast %cst_35 : f32 to vector<8x128xf32>
    %139 = arith.addf %138, %137 : vector<8x128xf32>
    %140 = arith.divf %138, %139 : vector<8x128xf32>
    %141 = arith.mulf %132, %107 : vector<8x128xf32>
    %142 = arith.mulf %126, %134 : vector<8x128xf32>
    %143 = arith.addf %141, %142 : vector<8x128xf32>
    %144 = math.tanh %143 : vector<8x128xf32>
    %145 = arith.mulf %140, %144 : vector<8x128xf32>
    %c0_36 = arith.constant 0 : index
    %146 = arith.index_cast %c3_i32 : i32 to index
    %c0_37 = arith.constant 0 : index
    %147 = vector.load %arg3[%c0_36, %146, %c0_37] : memref<8x8x128xf32, #tpu.memory_space<vmem>>, vector<8x1x128xf32>
    %148 = vector.shape_cast %147 : vector<8x1x128xf32> to vector<8x128xf32>
    %149 = vector.shape_cast %145 : vector<8x128xf32> to vector<8x1x128xf32>
    tpu.vector_store %arg3[%c0_36, %146, %c0_37], %149 {strides = array<i32>} : memref<8x8x128xf32, #tpu.memory_space<vmem>>, vector<8x1x128xf32>,
    %c4_i32 = arith.constant 4 : i32
    %150 = arith.index_cast %c4_i32 : i32 to index
    %c0_38 = arith.constant 0 : index
    %c0_39 = arith.constant 0 : index
    %151 = vector.load %arg1[%150, %c0_38, %c0_39] : memref<8x8x512xbf16, #tpu.memory_space<vmem>>, vector<1x8x512xbf16>
    %152 = vector.shape_cast %151 : vector<1x8x512xbf16> to vector<8x512xbf16>
    %153 = arith.extf %152 : vector<8x512xbf16> to vector<8x512xf32>
    %154 = arith.truncf %145 : vector<8x128xf32> to vector<8x128xbf16>
    %cst_40 = arith.constant dense<0.000000e+00> : vector<8x512xf32>
    %155 = tpu.matmul %154, %3, %cst_40 {dimension_numbers = #tpu.dot_dimension_numbers<[1], [0], [0], [1], [0, 0, 1, 1], [], []>} : vector<8x128xbf16>, vector<128x512xbf16>, vector<8x512xf32> -> vector<8x512xf32>
    %156 = arith.addf %153, %155 : vector<8x512xf32>
    %157 = vector.extract_strided_slice %156 {offsets = [0, 0], sizes = [8, 128], strides = [1, 1]} : vector<8x512xf32> to vector<8x128xf32>
    %158 = arith.negf %157 : vector<8x128xf32>
    %159 = math.exp %158 : vector<8x128xf32>
    %cst_41 = arith.constant 1.000000e+00 : f32
    %160 = vector.broadcast %cst_41 : f32 to vector<8x128xf32>
    %161 = arith.addf %160, %159 : vector<8x128xf32>
    %162 = arith.divf %160, %161 : vector<8x128xf32>
    %163 = vector.extract_strided_slice %156 {offsets = [0, 128], sizes = [8, 128], strides = [1, 1]} : vector<8x512xf32> to vector<8x128xf32>
    %164 = arith.negf %163 : vector<8x128xf32>
    %165 = math.exp %164 : vector<8x128xf32>
    %cst_42 = arith.constant 1.000000e+00 : f32
    %166 = vector.broadcast %cst_42 : f32 to vector<8x128xf32>
    %167 = arith.addf %166, %165 : vector<8x128xf32>
    %168 = arith.divf %166, %167 : vector<8x128xf32>
    %169 = vector.extract_strided_slice %156 {offsets = [0, 256], sizes = [8, 128], strides = [1, 1]} : vector<8x512xf32> to vector<8x128xf32>
    %170 = math.tanh %169 : vector<8x128xf32>
    %171 = vector.extract_strided_slice %156 {offsets = [0, 384], sizes = [8, 128], strides = [1, 1]} : vector<8x512xf32> to vector<8x128xf32>
    %172 = arith.negf %171 : vector<8x128xf32>
    %173 = math.exp %172 : vector<8x128xf32>
    %cst_43 = arith.constant 1.000000e+00 : f32
    %174 = vector.broadcast %cst_43 : f32 to vector<8x128xf32>
    %175 = arith.addf %174, %173 : vector<8x128xf32>
    %176 = arith.divf %174, %175 : vector<8x128xf32>
    %177 = arith.mulf %168, %143 : vector<8x128xf32>
    %178 = arith.mulf %162, %170 : vector<8x128xf32>
    %179 = arith.addf %177, %178 : vector<8x128xf32>
    %180 = math.tanh %179 : vector<8x128xf32>
    %181 = arith.mulf %176, %180 : vector<8x128xf32>
    %c0_44 = arith.constant 0 : index
    %182 = arith.index_cast %c4_i32 : i32 to index
    %c0_45 = arith.constant 0 : index
    %183 = vector.load %arg3[%c0_44, %182, %c0_45] : memref<8x8x128xf32, #tpu.memory_space<vmem>>, vector<8x1x128xf32>
    %184 = vector.shape_cast %183 : vector<8x1x128xf32> to vector<8x128xf32>
    %185 = vector.shape_cast %181 : vector<8x128xf32> to vector<8x1x128xf32>
    tpu.vector_store %arg3[%c0_44, %182, %c0_45], %185 {strides = array<i32>} : memref<8x8x128xf32, #tpu.memory_space<vmem>>, vector<8x1x128xf32>,
    %c5_i32 = arith.constant 5 : i32
    %186 = arith.index_cast %c5_i32 : i32 to index
    %c0_46 = arith.constant 0 : index
    %c0_47 = arith.constant 0 : index
    %187 = vector.load %arg1[%186, %c0_46, %c0_47] : memref<8x8x512xbf16, #tpu.memory_space<vmem>>, vector<1x8x512xbf16>
    %188 = vector.shape_cast %187 : vector<1x8x512xbf16> to vector<8x512xbf16>
    %189 = arith.extf %188 : vector<8x512xbf16> to vector<8x512xf32>
    %190 = arith.truncf %181 : vector<8x128xf32> to vector<8x128xbf16>
    %cst_48 = arith.constant dense<0.000000e+00> : vector<8x512xf32>
    %191 = tpu.matmul %190, %3, %cst_48 {dimension_numbers = #tpu.dot_dimension_numbers<[1], [0], [0], [1], [0, 0, 1, 1], [], []>} : vector<8x128xbf16>, vector<128x512xbf16>, vector<8x512xf32> -> vector<8x512xf32>
    %192 = arith.addf %189, %191 : vector<8x512xf32>
    %193 = vector.extract_strided_slice %192 {offsets = [0, 0], sizes = [8, 128], strides = [1, 1]} : vector<8x512xf32> to vector<8x128xf32>
    %194 = arith.negf %193 : vector<8x128xf32>
    %195 = math.exp %194 : vector<8x128xf32>
    %cst_49 = arith.constant 1.000000e+00 : f32
    %196 = vector.broadcast %cst_49 : f32 to vector<8x128xf32>
    %197 = arith.addf %196, %195 : vector<8x128xf32>
    %198 = arith.divf %196, %197 : vector<8x128xf32>
    %199 = vector.extract_strided_slice %192 {offsets = [0, 128], sizes = [8, 128], strides = [1, 1]} : vector<8x512xf32> to vector<8x128xf32>
    %200 = arith.negf %199 : vector<8x128xf32>
    %201 = math.exp %200 : vector<8x128xf32>
    %cst_50 = arith.constant 1.000000e+00 : f32
    %202 = vector.broadcast %cst_50 : f32 to vector<8x128xf32>
    %203 = arith.addf %202, %201 : vector<8x128xf32>
    %204 = arith.divf %202, %203 : vector<8x128xf32>
    %205 = vector.extract_strided_slice %192 {offsets = [0, 256], sizes = [8, 128], strides = [1, 1]} : vector<8x512xf32> to vector<8x128xf32>
    %206 = math.tanh %205 : vector<8x128xf32>
    %207 = vector.extract_strided_slice %192 {offsets = [0, 384], sizes = [8, 128], strides = [1, 1]} : vector<8x512xf32> to vector<8x128xf32>
    %208 = arith.negf %207 : vector<8x128xf32>
    %209 = math.exp %208 : vector<8x128xf32>
    %cst_51 = arith.constant 1.000000e+00 : f32
    %210 = vector.broadcast %cst_51 : f32 to vector<8x128xf32>
    %211 = arith.addf %210, %209 : vector<8x128xf32>
    %212 = arith.divf %210, %211 : vector<8x128xf32>
    %213 = arith.mulf %204, %179 : vector<8x128xf32>
    %214 = arith.mulf %198, %206 : vector<8x128xf32>
    %215 = arith.addf %213, %214 : vector<8x128xf32>
    %216 = math.tanh %215 : vector<8x128xf32>
    %217 = arith.mulf %212, %216 : vector<8x128xf32>
    %c0_52 = arith.constant 0 : index
    %218 = arith.index_cast %c5_i32 : i32 to index
    %c0_53 = arith.constant 0 : index
    %219 = vector.load %arg3[%c0_52, %218, %c0_53] : memref<8x8x128xf32, #tpu.memory_space<vmem>>, vector<8x1x128xf32>
    %220 = vector.shape_cast %219 : vector<8x1x128xf32> to vector<8x128xf32>
    %221 = vector.shape_cast %217 : vector<8x128xf32> to vector<8x1x128xf32>
    tpu.vector_store %arg3[%c0_52, %218, %c0_53], %221 {strides = array<i32>} : memref<8x8x128xf32, #tpu.memory_space<vmem>>, vector<8x1x128xf32>,
    %c6_i32 = arith.constant 6 : i32
    %222 = arith.index_cast %c6_i32 : i32 to index
    %c0_54 = arith.constant 0 : index
    %c0_55 = arith.constant 0 : index
    %223 = vector.load %arg1[%222, %c0_54, %c0_55] : memref<8x8x512xbf16, #tpu.memory_space<vmem>>, vector<1x8x512xbf16>
    %224 = vector.shape_cast %223 : vector<1x8x512xbf16> to vector<8x512xbf16>
    %225 = arith.extf %224 : vector<8x512xbf16> to vector<8x512xf32>
    %226 = arith.truncf %217 : vector<8x128xf32> to vector<8x128xbf16>
    %cst_56 = arith.constant dense<0.000000e+00> : vector<8x512xf32>
    %227 = tpu.matmul %226, %3, %cst_56 {dimension_numbers = #tpu.dot_dimension_numbers<[1], [0], [0], [1], [0, 0, 1, 1], [], []>} : vector<8x128xbf16>, vector<128x512xbf16>, vector<8x512xf32> -> vector<8x512xf32>
    %228 = arith.addf %225, %227 : vector<8x512xf32>
    %229 = vector.extract_strided_slice %228 {offsets = [0, 0], sizes = [8, 128], strides = [1, 1]} : vector<8x512xf32> to vector<8x128xf32>
    %230 = arith.negf %229 : vector<8x128xf32>
    %231 = math.exp %230 : vector<8x128xf32>
    %cst_57 = arith.constant 1.000000e+00 : f32
    %232 = vector.broadcast %cst_57 : f32 to vector<8x128xf32>
    %233 = arith.addf %232, %231 : vector<8x128xf32>
    %234 = arith.divf %232, %233 : vector<8x128xf32>
    %235 = vector.extract_strided_slice %228 {offsets = [0, 128], sizes = [8, 128], strides = [1, 1]} : vector<8x512xf32> to vector<8x128xf32>
    %236 = arith.negf %235 : vector<8x128xf32>
    %237 = math.exp %236 : vector<8x128xf32>
    %cst_58 = arith.constant 1.000000e+00 : f32
    %238 = vector.broadcast %cst_58 : f32 to vector<8x128xf32>
    %239 = arith.addf %238, %237 : vector<8x128xf32>
    %240 = arith.divf %238, %239 : vector<8x128xf32>
    %241 = vector.extract_strided_slice %228 {offsets = [0, 256], sizes = [8, 128], strides = [1, 1]} : vector<8x512xf32> to vector<8x128xf32>
    %242 = math.tanh %241 : vector<8x128xf32>
    %243 = vector.extract_strided_slice %228 {offsets = [0, 384], sizes = [8, 128], strides = [1, 1]} : vector<8x512xf32> to vector<8x128xf32>
    %244 = arith.negf %243 : vector<8x128xf32>
    %245 = math.exp %244 : vector<8x128xf32>
    %cst_59 = arith.constant 1.000000e+00 : f32
    %246 = vector.broadcast %cst_59 : f32 to vector<8x128xf32>
    %247 = arith.addf %246, %245 : vector<8x128xf32>
    %248 = arith.divf %246, %247 : vector<8x128xf32>
    %249 = arith.mulf %240, %215 : vector<8x128xf32>
    %250 = arith.mulf %234, %242 : vector<8x128xf32>
    %251 = arith.addf %249, %250 : vector<8x128xf32>
    %252 = math.tanh %251 : vector<8x128xf32>
    %253 = arith.mulf %248, %252 : vector<8x128xf32>
    %c0_60 = arith.constant 0 : index
    %254 = arith.index_cast %c6_i32 : i32 to index
    %c0_61 = arith.constant 0 : index
    %255 = vector.load %arg3[%c0_60, %254, %c0_61] : memref<8x8x128xf32, #tpu.memory_space<vmem>>, vector<8x1x128xf32>
    %256 = vector.shape_cast %255 : vector<8x1x128xf32> to vector<8x128xf32>
    %257 = vector.shape_cast %253 : vector<8x128xf32> to vector<8x1x128xf32>
    tpu.vector_store %arg3[%c0_60, %254, %c0_61], %257 {strides = array<i32>} : memref<8x8x128xf32, #tpu.memory_space<vmem>>, vector<8x1x128xf32>,
    %c7_i32 = arith.constant 7 : i32
    %258 = arith.index_cast %c7_i32 : i32 to index
    %c0_62 = arith.constant 0 : index
    %c0_63 = arith.constant 0 : index
    %259 = vector.load %arg1[%258, %c0_62, %c0_63] : memref<8x8x512xbf16, #tpu.memory_space<vmem>>, vector<1x8x512xbf16>
    %260 = vector.shape_cast %259 : vector<1x8x512xbf16> to vector<8x512xbf16>
    %261 = arith.extf %260 : vector<8x512xbf16> to vector<8x512xf32>
    %262 = arith.truncf %253 : vector<8x128xf32> to vector<8x128xbf16>
    %cst_64 = arith.constant dense<0.000000e+00> : vector<8x512xf32>
    %263 = tpu.matmul %262, %3, %cst_64 {dimension_numbers = #tpu.dot_dimension_numbers<[1], [0], [0], [1], [0, 0, 1, 1], [], []>} : vector<8x128xbf16>, vector<128x512xbf16>, vector<8x512xf32> -> vector<8x512xf32>
    %264 = arith.addf %261, %263 : vector<8x512xf32>
    %265 = vector.extract_strided_slice %264 {offsets = [0, 0], sizes = [8, 128], strides = [1, 1]} : vector<8x512xf32> to vector<8x128xf32>
    %266 = arith.negf %265 : vector<8x128xf32>
    %267 = math.exp %266 : vector<8x128xf32>
    %cst_65 = arith.constant 1.000000e+00 : f32
    %268 = vector.broadcast %cst_65 : f32 to vector<8x128xf32>
    %269 = arith.addf %268, %267 : vector<8x128xf32>
    %270 = arith.divf %268, %269 : vector<8x128xf32>
    %271 = vector.extract_strided_slice %264 {offsets = [0, 128], sizes = [8, 128], strides = [1, 1]} : vector<8x512xf32> to vector<8x128xf32>
    %272 = arith.negf %271 : vector<8x128xf32>
    %273 = math.exp %272 : vector<8x128xf32>
    %cst_66 = arith.constant 1.000000e+00 : f32
    %274 = vector.broadcast %cst_66 : f32 to vector<8x128xf32>
    %275 = arith.addf %274, %273 : vector<8x128xf32>
    %276 = arith.divf %274, %275 : vector<8x128xf32>
    %277 = vector.extract_strided_slice %264 {offsets = [0, 256], sizes = [8, 128], strides = [1, 1]} : vector<8x512xf32> to vector<8x128xf32>
    %278 = math.tanh %277 : vector<8x128xf32>
    %279 = vector.extract_strided_slice %264 {offsets = [0, 384], sizes = [8, 128], strides = [1, 1]} : vector<8x512xf32> to vector<8x128xf32>
    %280 = arith.negf %279 : vector<8x128xf32>
    %281 = math.exp %280 : vector<8x128xf32>
    %cst_67 = arith.constant 1.000000e+00 : f32
    %282 = vector.broadcast %cst_67 : f32 to vector<8x128xf32>
    %283 = arith.addf %282, %281 : vector<8x128xf32>
    %284 = arith.divf %282, %283 : vector<8x128xf32>
    %285 = arith.mulf %276, %251 : vector<8x128xf32>
    %286 = arith.mulf %270, %278 : vector<8x128xf32>
    %287 = arith.addf %285, %286 : vector<8x128xf32>
    %288 = math.tanh %287 : vector<8x128xf32>
    %289 = arith.mulf %284, %288 : vector<8x128xf32>
    %c0_68 = arith.constant 0 : index
    %290 = arith.index_cast %c7_i32 : i32 to index
    %c0_69 = arith.constant 0 : index
    %291 = vector.load %arg3[%c0_68, %290, %c0_69] : memref<8x8x128xf32, #tpu.memory_space<vmem>>, vector<8x1x128xf32>
    %292 = vector.shape_cast %291 : vector<8x1x128xf32> to vector<8x128xf32>
    %293 = vector.shape_cast %289 : vector<8x128xf32> to vector<8x1x128xf32>
    tpu.vector_store %arg3[%c0_68, %290, %c0_69], %293 {strides = array<i32>} : memref<8x8x128xf32, #tpu.memory_space<vmem>>, vector<8x1x128xf32>,
    %c8_i32 = arith.constant 8 : i32
    %c0_70 = arith.constant 0 : index
    %c0_71 = arith.constant 0 : index
    %294 = vector.load %arg5[%c0_70, %c0_71] : memref<8x128xf32, #tpu.memory_space<vmem>>, vector<8x128xf32>
    tpu.vector_store %arg5[%c0_70, %c0_71], %289 {strides = array<i32>} : memref<8x128xf32, #tpu.memory_space<vmem>>, vector<8x128xf32>,
    %c0_72 = arith.constant 0 : index
    %c0_73 = arith.constant 0 : index
    %295 = vector.load %arg6[%c0_72, %c0_73] : memref<8x128xf32, #tpu.memory_space<vmem>>, vector<8x128xf32>
    tpu.vector_store %arg6[%c0_72, %c0_73], %287 {strides = array<i32>} : memref<8x128xf32, #tpu.memory_space<vmem>>, vector<8x128xf32>,
    %c0_i32_74 = arith.constant 0 : i32
    %296 = arith.cmpi eq, %arg0, %c0_i32_74 : i32
    %297 = arith.extui %296 : i1 to i32
    %c0_i32_75 = arith.constant 0 : i32
    %298 = arith.cmpi ne, %297, %c0_i32_75 : i32
    scf.if %298 {
      %c0_76 = arith.constant 0 : index
      %c0_77 = arith.constant 0 : index
      %299 = vector.load %arg4[%c0_76, %c0_77] : memref<8x128xf32, #tpu.memory_space<vmem>>, vector<8x128xf32>
      tpu.vector_store %arg4[%c0_76, %c0_77], %287 {strides = array<i32>} : memref<8x128xf32, #tpu.memory_space<vmem>>, vector<8x128xf32>,
    } else {
    }
    return
  }
  func.func @transform_0(%arg0: i32) -> (i32, i32, i32) {
    %c0_i32 = arith.constant 0 : i32
    %c0_i32_0 = arith.constant 0 : i32
    %c0_i32_1 = arith.constant 0 : i32
    return %arg0, %c0_i32, %c0_i32_0 : i32, i32, i32
  }
  func.func @transform_1(%arg0: i32) -> (i32, i32) {
    %c0_i32 = arith.constant 0 : i32
    %c0_i32_0 = arith.constant 0 : i32
    %c0_i32_1 = arith.constant 0 : i32
    return %c0_i32, %c0_i32_0 : i32, i32
  }
  func.func @transform_2(%arg0: i32) -> (i32, i32, i32) {
    %c0_i32 = arith.constant 0 : i32
    %c0_i32_0 = arith.constant 0 : i32
    %c0_i32_1 = arith.constant 0 : i32
    return %c0_i32, %arg0, %c0_i32_0 : i32, i32, i32
  }
  func.func @transform_3(%arg0: i32) -> (i32, i32) {
    %c0_i32 = arith.constant 0 : i32
    %c0_i32_0 = arith.constant 0 : i32
    %c0_i32_1 = arith.constant 0 : i32
    return %c0_i32, %c0_i32_0 : i32, i32
  }
}

</mosaic_0001>

<bundles_post_ra>
// kernel: encoder_forward.1
= control target key start
LH: loop header
LB: loop body
LE: loop exit
PB: predicated region body
PF: predicated region fallthrough
CT: control target
= control target key end

     0   :  { %v2012_v1 = vmov 0   ;;  %v2013_v33 = vmov 0.0|0.0   ;;  %s2948_s1 = inlined_call_operand.vmem [shape: bf16[128,512], index: 1, kind: input, shape index: {}]   ;;  %s2949_s0 = inlined_call_operand.vmem [shape: bf16[8,8,512], index: 0, kind: input, shape index: {}]   ;;  %s2950_s2 = inlined_call_operand.vmem [shape: f32[8,8,128], index: 2, kind: output, shape index: {0}]   ;;  %s2951_s3 = inlined_call_operand.vmem [shape: f32[8,128], index: 3, kind: output, shape index: {1}]  }
   0x1   :  { %v2038_v0 = vld [vmem:[%s2948_s1 + $0x4] ss:$16 sps:$4 sm:$0xff]   ;;  %253 = vmatprep.mubr.bf16.mxu0 %v2012_v1  ;;  %294 = vmatprep.mubr.bf16.mxu1 %v2012_v1  ;;  %v2045_v2 = vld [vmem:[%s2948_s1] ss:$16 sps:$4 sm:$0xff]   ;;  %v2068_v6 = vld [vmem:[%s2948_s1 + $0xc] ss:$16 sps:$4 sm:$0xff]  }
   0x2   :  { %221 = vmatprep.subr.bf16.mxu0 %v2038_v0  ;;  %v2051_v3 = vld [vmem:[%s2948_s1 + $0x24] ss:$16 sps:$4 sm:$0xff]   ;;  %v2057_v4 = vld [vmem:[%s2948_s1 + $0x20] ss:$16 sps:$4 sm:$0xff]   ;;  %v2073_v7 = vld [vmem:[%s2948_s1 + $0x8] ss:$16 sps:$4 sm:$0xff]   ;;  %262 = vmatprep.subr.bf16.mxu1 %v2068_v6 }
   0x3   :  { %222 = vmatpush1.bf16.msra.mxu0 %v2045_v2  ;;  %v2063_v5 = vld [vmem:[%s2948_s1 + $0x44] ss:$16 sps:$4 sm:$0xff]   ;;  %v2079_v8 = vld [vmem:[%s2948_s1 + $0x40] ss:$16 sps:$4 sm:$0xff]   ;;  %263 = vmatpush1.bf16.msra.mxu1 %v2073_v7  ;;  %v2092_v10 = vld [vmem:[%s2948_s1 + $0x2c] ss:$16 sps:$4 sm:$0xff]  }
   0x4   :  { %223 = vmatprep.subr.bf16.mxu0 %v2051_v3  ;;  %v2086_v9 = vld [vmem:[%s2948_s1 + $0x64] ss:$16 sps:$4 sm:$0xff]   ;;  %v2097_v11 = vld [vmem:[%s2948_s1 + $0x28] ss:$16 sps:$4 sm:$0xff]   ;;  %264 = vmatprep.subr.bf16.mxu1 %v2092_v10  ;;  %v2104_v12 = vld [vmem:[%s2948_s1 + $0x60] ss:$16 sps:$4 sm:$0xff]  }
   0x5   :  { %v2109_v13 = vld [vmem:[%s2948_s1 + $0x84] ss:$16 sps:$4 sm:$0xff]   ;;  %v2114_v14 = vld [vmem:[%s2948_s1 + $0x4c] ss:$16 sps:$4 sm:$0xff]   ;;  %v2121_v15 = vld [vmem:[%s2948_s1 + $0x48] ss:$16 sps:$4 sm:$0xff]  }
   0x6   :  { %v2127_v16 = vld [vmem:[%s2948_s1 + $0x6c] ss:$16 sps:$4 sm:$0xff]   ;;  %v2133_v17 = vld [vmem:[%s2948_s1 + $0x80] ss:$16 sps:$4 sm:$0xff]   ;;  %v2139_v18 = vld [vmem:[%s2948_s1 + $0xa4] ss:$16 sps:$4 sm:$0xff]  }
   0x7   :  { %224 = vmatpush1.bf16.msra.mxu0 %v2057_v4  ;;  %265 = vmatpush1.bf16.msra.mxu1 %v2097_v11  ;;  %v2145_v19 = vld [vmem:[%s2948_s1 + $0x68] ss:$16 sps:$4 sm:$0xff]   ;;  %v2151_v20 = vld [vmem:[%s2948_s1 + $0x8c] ss:$16 sps:$4 sm:$0xff]   ;;  %v2157_v21 = vld [vmem:[%s2948_s1 + $0xa0] ss:$16 sps:$4 sm:$0xff]  }
   0x8   :  { %225 = vmatprep.subr.bf16.mxu0 %v2063_v5  ;;  %266 = vmatprep.subr.bf16.mxu1 %v2114_v14  ;;  %v2162_v22 = vld [vmem:[%s2948_s1 + $0xc4] ss:$16 sps:$4 sm:$0xff]   ;;  %v2169_v23 = vld [vmem:[%s2948_s1 + $0x88] ss:$16 sps:$4 sm:$0xff]   ;;  %v2175_v24 = vld [vmem:[%s2948_s1 + $0xac] ss:$16 sps:$4 sm:$0xff]  }
   0x9   :  { %v2181_v25 = vld [vmem:[%s2948_s1 + $0xc0] ss:$16 sps:$4 sm:$0xff]   ;;  %v2187_v26 = vld [vmem:[%s2948_s1 + $0xe4] ss:$16 sps:$4 sm:$0xff]   ;;  %v2193_v27 = vld [vmem:[%s2948_s1 + $0xa8] ss:$16 sps:$4 sm:$0xff]  }
   0xa   :  { %v2199_v28 = vld [vmem:[%s2948_s1 + $0xcc] ss:$16 sps:$4 sm:$0xff]   ;;  %v2205_v29 = vld [vmem:[%s2948_s1 + $0xe0] ss:$16 sps:$4 sm:$0xff]   ;;  %v2212_v30 = vld [vmem:[%s2948_s1 + $0xc8] ss:$16 sps:$4 sm:$0xff]  }
   0xb   :  { %226 = vmatpush1.bf16.msra.mxu0 %v2079_v8  ;;  %267 = vmatpush1.bf16.msra.mxu1 %v2121_v15  ;;  %v2218_v31 = vld [vmem:[%s2948_s1 + $0xec] ss:$16 sps:$4 sm:$0xff]   ;;  %v2225_v32 = vld [vmem:[%s2948_s1 + $0xe8] ss:$16 sps:$4 sm:$0xff]   ;;  %v54_v34 = vld [vmem:[%s2949_s0] sm:$0xff] }
   0xc   :  { %227 = vmatprep.subr.bf16.mxu0 %v2086_v9  ;;  %268 = vmatprep.subr.bf16.mxu1 %v2127_v16  ;;  %v56_v35 = vunpack.c.l.bf16 %v54_v34  ;;  %v57_v36 = vunpack.c.h.bf16 %v54_v34  ;;  %v55_v38 = vld [vmem:[%s2949_s0 + $0x8] sm:$0xff] }
   0xd   :  { %v59_v45 = vunpack.c.h.bf16 %v55_v38  ;;  %v58_v51 = vunpack.c.l.bf16 %v55_v38  ;;  %v336_v38 = vlaneseq }
   0xf   :  { %228 = vmatpush1.bf16.msra.mxu0 %v2104_v12  ;;  %269 = vmatpush1.bf16.msra.mxu1 %v2145_v19 }
  0x10   :  { %229 = vmatprep.subr.bf16.mxu0 %v2109_v13  ;;  %270 = vmatprep.subr.bf16.mxu1 %v2151_v20 }
  0x13   :  { %230 = vmatpush1.bf16.msra.mxu0 %v2133_v17  ;;  %271 = vmatpush1.bf16.msra.mxu1 %v2169_v23 }
  0x14   :  { %231 = vmatprep.subr.bf16.mxu0 %v2139_v18  ;;  %272 = vmatprep.subr.bf16.mxu1 %v2175_v24 }
  0x17   :  { %232 = vmatpush1.bf16.msra.mxu0 %v2157_v21  ;;  %273 = vmatpush1.bf16.msra.mxu1 %v2193_v27 }
  0x18   :  { %233 = vmatprep.subr.bf16.mxu0 %v2162_v22  ;;  %274 = vmatprep.subr.bf16.mxu1 %v2199_v28 }
  0x1b   :  { %234 = vmatpush1.bf16.msra.mxu0 %v2181_v25  ;;  %275 = vmatpush1.bf16.msra.mxu1 %v2212_v30 }
  0x1c   :  { %235 = vmatprep.subr.bf16.mxu0 %v2187_v26  ;;  %276 = vmatprep.subr.bf16.mxu1 %v2218_v31 }
  0x1f   :  { %236 = vmatpush1.bf16.msra.mxu0 %v2205_v29  ;;  %277 = vmatpush1.bf16.msra.mxu1 %v2225_v32 }
  0x20   :  { %405 = vmatprep.subr.bf16.mxu0 %v2038_v0  ;;  %446 = vmatprep.subr.bf16.mxu1 %v2068_v6 }
  0x22   :  { %254 = vmatmul.mubr.bf16.vlgmr.msra.gmra.mrb[0].mxu0 %v2013_v33  ;;  %295 = vmatmul.mubr.bf16.vlgmr.msra.gmra.mrb[0].mxu1 %v2013_v33 }
  0x23   :  { %406 = vmatpush1.bf16.msra.mxu0 %v2045_v2  ;;  %437 = vmatprep.mubr.bf16.mxu0 %v2012_v1 }
  0x24   :  { %407 = vmatprep.subr.bf16.mxu0 %v2051_v3  ;;  %447 = vmatpush1.bf16.msra.mxu1 %v2073_v7 }
  0x25   :  { %448 = vmatprep.subr.bf16.mxu1 %v2092_v10  ;;  %478 = vmatprep.mubr.bf16.mxu1 %v2012_v1 }
  0x27   :  { %408 = vmatpush1.bf16.msra.mxu0 %v2057_v4 }
  0x28   :  { %409 = vmatprep.subr.bf16.mxu0 %v2063_v5  ;;  %449 = vmatpush1.bf16.msra.mxu1 %v2097_v11 }
  0x29   :  { %450 = vmatprep.subr.bf16.mxu1 %v2114_v14 }
  0x2b   :  { %410 = vmatpush1.bf16.msra.mxu0 %v2079_v8 }
  0x2c   :  { %411 = vmatprep.subr.bf16.mxu0 %v2086_v9  ;;  %451 = vmatpush1.bf16.msra.mxu1 %v2121_v15 }
  0x2d   :  { %452 = vmatprep.subr.bf16.mxu1 %v2127_v16 }
  0x2f   :  { %412 = vmatpush1.bf16.msra.mxu0 %v2104_v12 }
  0x30   :  { %413 = vmatprep.subr.bf16.mxu0 %v2109_v13  ;;  %453 = vmatpush1.bf16.msra.mxu1 %v2145_v19 }
  0x31   :  { %454 = vmatprep.subr.bf16.mxu1 %v2151_v20 }
  0x33   :  { %414 = vmatpush1.bf16.msra.mxu0 %v2133_v17 }
  0x34   :  { %415 = vmatprep.subr.bf16.mxu0 %v2139_v18  ;;  %455 = vmatpush1.bf16.msra.mxu1 %v2169_v23 }
  0x35   :  { %456 = vmatprep.subr.bf16.mxu1 %v2175_v24 }
  0x37   :  { %416 = vmatpush1.bf16.msra.mxu0 %v2157_v21 }
  0x38   :  { %417 = vmatprep.subr.bf16.mxu0 %v2162_v22  ;;  %457 = vmatpush1.bf16.msra.mxu1 %v2193_v27 }
  0x39   :  { %458 = vmatprep.subr.bf16.mxu1 %v2199_v28 }
  0x3b   :  { %418 = vmatpush1.bf16.msra.mxu0 %v2181_v25 }
  0x3c   :  { %419 = vmatprep.subr.bf16.mxu0 %v2187_v26  ;;  %459 = vmatpush1.bf16.msra.mxu1 %v2212_v30 }
  0x3d   :  { %460 = vmatprep.subr.bf16.mxu1 %v2218_v31 }
  0x3f   :  { %420 = vmatpush1.bf16.msra.mxu0 %v2205_v29 }
  0x40   :  { %589 = vmatprep.subr.bf16.mxu0 %v2038_v0  ;;  %461 = vmatpush1.bf16.msra.mxu1 %v2225_v32 }
  0x41   :  { %630 = vmatprep.subr.bf16.mxu1 %v2068_v6 }
  0xf5   :  { %v255_v37 = vpop.f32.mrb[0].mxu0  ;;  %v296_v47 = vpop.f32.mrb[0].mxu1 }
  0xf6   :  { %v303_v39 = vadd.f32 %v255_v37, %v56_v35  ;;  %v257_v40 = vpop.f32.mrb[1].mxu0  ;;  %v298_v48 = vpop.f32.mrb[1].mxu1  ;;  %v305_v54 = vadd.f32 %v296_v47, %v58_v51 }
  0xf7   :  { %v304_v41 = vadd.f32 %v257_v40, %v57_v36  ;;  %v259_v42 = vpop.f32.mrb[2].mxu0  ;;  %v306_v49 = vadd.f32 %v298_v48, %v59_v45  ;;  %v300_v50 = vpop.f32.mrb[2].mxu1  ;;  %v2014_v36 = vmov 1966171168   ;;  %v337_v40 = vshrl.u32 %v336_v38, 7 }
  0xf8   :  { %v1731_v43 = vmul.f32 -1.442695, %v303_v39  ;;  %v260_v44 = vpop.f32.mrb[3].mxu0  ;;  %v301_v52 = vpop.f32.mrb[3].mxu1  ;;  %v334_v37 = vunpack.c.l.s4 %v2014_v36 }
  0xf9   :  { %v1732_v46 = vmul.f32 -1.442695, %v304_v41  ;;  %v1733_v53 = vmul.f32 -1.442695, %v306_v49 }
  0xfa   :  { %1852 = vpow2.f32 %v1731_v43  ;;  %v335_v39 = vunpack.c.0.s8 %v334_v37 }
  0xfb   :  { %1854 = vpow2.f32 %v1732_v46 }
  0xfc   :  { %1856 = vpow2.f32 %v1733_v53  ;;  %v2274_v42 = vsub.s32 %v335_v39, %v337_v40 }
  0xfd   :  { %1858 = vtanh.f32 %v305_v54 }
 0x104   :  { %v1853_v55 = vpop.eup %1852 }
 0x105   :  { %v1855_v56 = vpop.eup %1854  ;;  %v310_v57 = vadd.f32 1.0, %v1853_v55 }
 0x106   :  { %v316_v58 = vadd.f32 1.0, %v1855_v56  ;;  %v1857_v59 = vpop.eup %1856 }
 0x107   :  { %1860 = vrcp.f32 %v310_v57  ;;  %v1859_v60 = vpop.eup %1858  ;;  %v323_v62 = vadd.f32 1.0, %v1857_v59  ;;  %v1738_v59 = vld [vmem:[%s2949_s0 + $0x10] sm:$0xff] }
 0x108   :  { %1862 = vrcp.f32 %v316_v58 }
 0x109   :  { %1864 = vrcp.f32 %v323_v62 }
 0x111   :  { %v1861_v61 = vpop.eup %1860 }
 0x112   :  { %v1863_v63 = vpop.eup %1862  ;;  %v327_v33 = vmul.f32 %v1861_v61, %v1859_v60  ;;  %v400_v60 = vunpack.c.l.bf16 %v1738_v59  ;;  %v401_v61 = vunpack.c.h.bf16 %v1738_v59 }
 0x113   :  { %v326_v34 = vmul.f32 0.0, %v1863_v63  ;;  %v1865_v41 = vpop.eup %1864 }
 0x115   :  { %v2271_v35 = vadd.f32 %v327_v33, %v326_v34  ;;  %v1739_v34 = vld [vmem:[%s2949_s0 + $0x18] sm:$0xff] }
 0x117   :  { %1866 = vtanh.f32 %v2271_v35 }
 0x121   :  { %v1867_v43 = vpop.eup %1866 }
 0x122   :  { %v330_v44 = vmul.f32 %v1867_v43, %v1865_v41 }
 0x124   :  { %v332_v45 = vcombine.high %v330_v44, %v330_v44  ;;  %v339_v46 = vrot.slane %v330_v44, %v2274_v42  ;;  %v404_v47 = vpack.c.bf16 %v330_v44, %v330_v44 }
 0x126   :  { %v346_v48 = vrot.slane %v332_v45, %v2274_v42  ;;  %v347_v49 = vcombine.high %v339_v46, %v339_v46  ;;  %v355_v50 = vrot.slane %v339_v46, %v2274_v42  ;;  %1734 = vst.sshfl [vmem:[%s2950_s2] sm:$0x1 pattern:$0x73625140] %v339_v46  ;;  %438 = vmatmul.mubr.bf16.vlgmr.msra.gmra.mrb[4].mxu0 %v404_v47  ;;  %v403_v46 = vunpack.c.h.bf16 %v1739_v34 }
 0x127   :  { %479 = vmatmul.mubr.bf16.vlgmr.msra.gmra.mrb[4].mxu1 %v404_v47  ;;  %590 = vmatpush1.bf16.msra.mxu0 %v2045_v2 }
 0x128   :  { %631 = vmatpush1.bf16.msra.mxu1 %v2073_v7  ;;  %v348_v51 = vcombine.high %v346_v48, %v346_v48  ;;  %v362_v52 = vrot.slane %v346_v48, %v2274_v42  ;;  %v369_v53 = vrot.slane %v347_v49, %v2274_v42  ;;  %v377_v54 = vcombine.high %v355_v50, %v355_v50 }
 0x129   :  { %1735 = vst.sshfl [vmem:[%s2950_s2 + $0x8] sm:$0x1 pattern:$0x73625140] %v347_v49  ;;  %591 = vmatprep.subr.bf16.mxu0 %v2051_v3  ;;  %632 = vmatprep.subr.bf16.mxu1 %v2092_v10 }
 0x12a   :  { %1736 = vst.sshfl [vmem:[%s2950_s2 + $0x20] sm:$0x1 pattern:$0x73625140] %v346_v48  ;;  %621 = vmatprep.mubr.bf16.mxu0 %v2012_v1  ;;  %v376_v55 = vrot.slane %v348_v51, %v2274_v42  ;;  %v378_v56 = vcombine.high %v362_v52, %v362_v52  ;;  %v379_v57 = vcombine.high %v369_v53, %v369_v53  ;;  %391 = vst [vmem:[%s2950_s2 + $0x10] sm:$0x1] %v377_v54 }
 0x12b   :  { %1737 = vst.sshfl [vmem:[%s2950_s2 + $0x28] sm:$0x1 pattern:$0x73625140] %v348_v51  ;;  %662 = vmatprep.mubr.bf16.mxu1 %v2012_v1  ;;  %592 = vmatpush1.bf16.msra.mxu0 %v2057_v4  ;;  %v402_v48 = vunpack.c.l.bf16 %v1739_v34 }
 0x12c   :  { %633 = vmatpush1.bf16.msra.mxu1 %v2097_v11  ;;  %v380_v58 = vcombine.high %v376_v55, %v376_v55  ;;  %392 = vst [vmem:[%s2950_s2 + $0x18] sm:$0x1] %v379_v57  ;;  %395 = vst [vmem:[%s2950_s2 + $0x30] sm:$0x1] %v378_v56  ;;  %593 = vmatprep.subr.bf16.mxu0 %v2063_v5 }
 0x12d   :  { %634 = vmatprep.subr.bf16.mxu1 %v2114_v14 }
 0x12e   :  { %396 = vst [vmem:[%s2950_s2 + $0x38] sm:$0x1] %v380_v58 }
 0x12f   :  { %594 = vmatpush1.bf16.msra.mxu0 %v2079_v8 }
 0x130   :  { %635 = vmatpush1.bf16.msra.mxu1 %v2121_v15  ;;  %595 = vmatprep.subr.bf16.mxu0 %v2086_v9 }
 0x131   :  { %636 = vmatprep.subr.bf16.mxu1 %v2127_v16 }
 0x133   :  { %596 = vmatpush1.bf16.msra.mxu0 %v2104_v12 }
 0x134   :  { %637 = vmatpush1.bf16.msra.mxu1 %v2145_v19  ;;  %597 = vmatprep.subr.bf16.mxu0 %v2109_v13 }
 0x135   :  { %638 = vmatprep.subr.bf16.mxu1 %v2151_v20 }
 0x137   :  { %598 = vmatpush1.bf16.msra.mxu0 %v2133_v17 }
 0x138   :  { %639 = vmatpush1.bf16.msra.mxu1 %v2169_v23  ;;  %599 = vmatprep.subr.bf16.mxu0 %v2139_v18 }
 0x139   :  { %640 = vmatprep.subr.bf16.mxu1 %v2175_v24 }
 0x13b   :  { %600 = vmatpush1.bf16.msra.mxu0 %v2157_v21 }
 0x13c   :  { %641 = vmatpush1.bf16.msra.mxu1 %v2193_v27  ;;  %601 = vmatprep.subr.bf16.mxu0 %v2162_v22 }
 0x13d   :  { %642 = vmatprep.subr.bf16.mxu1 %v2199_v28 }
 0x13f   :  { %602 = vmatpush1.bf16.msra.mxu0 %v2181_v25 }
 0x140   :  { %643 = vmatpush1.bf16.msra.mxu1 %v2212_v30  ;;  %603 = vmatprep.subr.bf16.mxu0 %v2187_v26 }
 0x141   :  { %644 = vmatprep.subr.bf16.mxu1 %v2218_v31 }
 0x143   :  { %604 = vmatpush1.bf16.msra.mxu0 %v2205_v29 }
 0x144   :  { %645 = vmatpush1.bf16.msra.mxu1 %v2225_v32  ;;  %773 = vmatprep.subr.bf16.mxu0 %v2038_v0 }
 0x145   :  { %814 = vmatprep.subr.bf16.mxu1 %v2068_v6 }
 0x1f9   :  { %v439_v62 = vpop.f32.mrb[4].mxu0 }
 0x1fa   :  { %v480_v63 = vpop.f32.mrb[4].mxu1  ;;  %v487_v33 = vadd.f32 %v439_v62, %v400_v60  ;;  %v441_v36 = vpop.f32.mrb[5].mxu0 }
 0x1fb   :  { %v482_v37 = vpop.f32.mrb[5].mxu1  ;;  %v488_v38 = vadd.f32 %v441_v36, %v401_v61  ;;  %v443_v39 = vpop.f32.mrb[6].mxu0  ;;  %v489_v50 = vadd.f32 %v480_v63, %v402_v48 }
 0x1fc   :  { %v484_v40 = vpop.f32.mrb[6].mxu1  ;;  %v1740_v41 = vmul.f32 -1.442695, %v487_v33  ;;  %v444_v43 = vpop.f32.mrb[7].mxu0  ;;  %v490_v47 = vadd.f32 %v482_v37, %v403_v46 }
 0x1fd   :  { %v485_v44 = vpop.f32.mrb[7].mxu1  ;;  %v1741_v45 = vmul.f32 -1.442695, %v488_v38 }
 0x1fe   :  { %1868 = vpow2.f32 %v1740_v41  ;;  %v1742_v49 = vmul.f32 -1.442695, %v490_v47 }
 0x1ff   :  { %1870 = vpow2.f32 %v1741_v45 }
 0x200   :  { %1872 = vpow2.f32 %v1742_v49 }
 0x201   :  { %1874 = vtanh.f32 %v489_v50  ;;  %v1747_v50 = vld [vmem:[%s2949_s0 + $0x20] sm:$0xff] }
 0x208   :  { %v1869_v51 = vpop.eup %1868 }
 0x209   :  { %v1871_v52 = vpop.eup %1870  ;;  %v494_v53 = vadd.f32 1.0, %v1869_v51  ;;  %v584_v51 = vunpack.c.l.bf16 %v1747_v50 }
 0x20a   :  { %v500_v54 = vadd.f32 1.0, %v1871_v52  ;;  %v1873_v55 = vpop.eup %1872  ;;  %v585_v52 = vunpack.c.h.bf16 %v1747_v50 }
 0x20b   :  { %1876 = vrcp.f32 %v494_v53  ;;  %v1875_v56 = vpop.eup %1874  ;;  %v507_v60 = vadd.f32 1.0, %v1873_v55 }
 0x20c   :  { %1878 = vrcp.f32 %v500_v54 }
 0x20d   :  { %1880 = vrcp.f32 %v507_v60 }
 0x215   :  { %v1877_v57 = vpop.eup %1876 }
 0x216   :  { %v1879_v58 = vpop.eup %1878  ;;  %v511_v59 = vmul.f32 %v1877_v57, %v1875_v56  ;;  %v1748_v56 = vld [vmem:[%s2949_s0 + $0x28] sm:$0xff] }
 0x217   :  { %v510_v61 = vmul.f32 %v1879_v58, %v2271_v35  ;;  %v1881_v63 = vpop.eup %1880 }
 0x219   :  { %v2347_v62 = vadd.f32 %v511_v59, %v510_v61 }
 0x21b   :  { %1882 = vtanh.f32 %v2347_v62 }
 0x225   :  { %v1883_v33 = vpop.eup %1882 }
 0x226   :  { %v514_v34 = vmul.f32 %v1883_v33, %v1881_v63 }
 0x228   :  { %v516_v36 = vcombine.high %v514_v34, %v514_v34  ;;  %v523_v37 = vrot.slane %v514_v34, %v2274_v42  ;;  %v588_v38 = vpack.c.bf16 %v514_v34, %v514_v34 }
 0x22a   :  { %v530_v39 = vrot.slane %v516_v36, %v2274_v42  ;;  %v531_v40 = vcombine.high %v523_v37, %v523_v37  ;;  %v539_v41 = vrot.slane %v523_v37, %v2274_v42  ;;  %1743 = vst.sshfl [vmem:[%s2950_s2 + $0x1] sm:$0x1 pattern:$0x73625140] %v523_v37  ;;  %622 = vmatmul.mubr.bf16.vlgmr.msra.gmra.mrb[8].mxu0 %v588_v38  ;;  %v587_v37 = vunpack.c.h.bf16 %v1748_v56 }
 0x22b   :  { %663 = vmatmul.mubr.bf16.vlgmr.msra.gmra.mrb[8].mxu1 %v588_v38  ;;  %774 = vmatpush1.bf16.msra.mxu0 %v2045_v2 }
 0x22c   :  { %815 = vmatpush1.bf16.msra.mxu1 %v2073_v7  ;;  %v532_v35 = vcombine.high %v530_v39, %v530_v39  ;;  %v546_v43 = vrot.slane %v530_v39, %v2274_v42  ;;  %v553_v44 = vrot.slane %v531_v40, %v2274_v42  ;;  %v561_v45 = vcombine.high %v539_v41, %v539_v41 }
 0x22d   :  { %1744 = vst.sshfl [vmem:[%s2950_s2 + $0x9] sm:$0x1 pattern:$0x73625140] %v531_v40  ;;  %775 = vmatprep.subr.bf16.mxu0 %v2051_v3  ;;  %816 = vmatprep.subr.bf16.mxu1 %v2092_v10 }
 0x22e   :  { %1745 = vst.sshfl [vmem:[%s2950_s2 + $0x21] sm:$0x1 pattern:$0x73625140] %v530_v39  ;;  %805 = vmatprep.mubr.bf16.mxu0 %v2012_v1  ;;  %v560_v46 = vrot.slane %v532_v35, %v2274_v42  ;;  %v562_v47 = vcombine.high %v546_v43, %v546_v43  ;;  %v563_v48 = vcombine.high %v553_v44, %v553_v44  ;;  %575 = vst [vmem:[%s2950_s2 + $0x11] sm:$0x1] %v561_v45 }
 0x22f   :  { %1746 = vst.sshfl [vmem:[%s2950_s2 + $0x29] sm:$0x1 pattern:$0x73625140] %v532_v35  ;;  %846 = vmatprep.mubr.bf16.mxu1 %v2012_v1  ;;  %776 = vmatpush1.bf16.msra.mxu0 %v2057_v4  ;;  %v586_v39 = vunpack.c.l.bf16 %v1748_v56 }
 0x230   :  { %817 = vmatpush1.bf16.msra.mxu1 %v2097_v11  ;;  %v564_v49 = vcombine.high %v560_v46, %v560_v46  ;;  %576 = vst [vmem:[%s2950_s2 + $0x19] sm:$0x1] %v563_v48  ;;  %579 = vst [vmem:[%s2950_s2 + $0x31] sm:$0x1] %v562_v47  ;;  %777 = vmatprep.subr.bf16.mxu0 %v2063_v5 }
 0x231   :  { %818 = vmatprep.subr.bf16.mxu1 %v2114_v14 }
 0x232   :  { %580 = vst [vmem:[%s2950_s2 + $0x39] sm:$0x1] %v564_v49 }
 0x233   :  { %778 = vmatpush1.bf16.msra.mxu0 %v2079_v8 }
 0x234   :  { %819 = vmatpush1.bf16.msra.mxu1 %v2121_v15  ;;  %779 = vmatprep.subr.bf16.mxu0 %v2086_v9 }
 0x235   :  { %820 = vmatprep.subr.bf16.mxu1 %v2127_v16 }
 0x237   :  { %780 = vmatpush1.bf16.msra.mxu0 %v2104_v12 }
 0x238   :  { %821 = vmatpush1.bf16.msra.mxu1 %v2145_v19  ;;  %781 = vmatprep.subr.bf16.mxu0 %v2109_v13 }
 0x239   :  { %822 = vmatprep.subr.bf16.mxu1 %v2151_v20 }
 0x23b   :  { %782 = vmatpush1.bf16.msra.mxu0 %v2133_v17 }
 0x23c   :  { %823 = vmatpush1.bf16.msra.mxu1 %v2169_v23  ;;  %783 = vmatprep.subr.bf16.mxu0 %v2139_v18 }
 0x23d   :  { %824 = vmatprep.subr.bf16.mxu1 %v2175_v24 }
 0x23f   :  { %784 = vmatpush1.bf16.msra.mxu0 %v2157_v21 }
 0x240   :  { %825 = vmatpush1.bf16.msra.mxu1 %v2193_v27  ;;  %785 = vmatprep.subr.bf16.mxu0 %v2162_v22 }
 0x241   :  { %826 = vmatprep.subr.bf16.mxu1 %v2199_v28 }
 0x243   :  { %786 = vmatpush1.bf16.msra.mxu0 %v2181_v25 }
 0x244   :  { %827 = vmatpush1.bf16.msra.mxu1 %v2212_v30  ;;  %787 = vmatprep.subr.bf16.mxu0 %v2187_v26 }
 0x245   :  { %828 = vmatprep.subr.bf16.mxu1 %v2218_v31 }
 0x247   :  { %788 = vmatpush1.bf16.msra.mxu0 %v2205_v29 }
 0x248   :  { %829 = vmatpush1.bf16.msra.mxu1 %v2225_v32  ;;  %957 = vmatprep.subr.bf16.mxu0 %v2038_v0 }
 0x249   :  { %998 = vmatprep.subr.bf16.mxu1 %v2068_v6 }
 0x2fd   :  { %v623_v53 = vpop.f32.mrb[8].mxu0 }
 0x2fe   :  { %v664_v54 = vpop.f32.mrb[8].mxu1  ;;  %v671_v55 = vadd.f32 %v623_v53, %v584_v51  ;;  %v625_v57 = vpop.f32.mrb[9].mxu0 }
 0x2ff   :  { %v666_v58 = vpop.f32.mrb[9].mxu1  ;;  %v672_v59 = vadd.f32 %v625_v57, %v585_v52  ;;  %v627_v60 = vpop.f32.mrb[10].mxu0  ;;  %v673_v41 = vadd.f32 %v664_v54, %v586_v39 }
 0x300   :  { %v668_v61 = vpop.f32.mrb[10].mxu1  ;;  %v1749_v63 = vmul.f32 -1.442695, %v671_v55  ;;  %v628_v33 = vpop.f32.mrb[11].mxu0  ;;  %v674_v38 = vadd.f32 %v666_v58, %v587_v37 }
 0x301   :  { %v669_v34 = vpop.f32.mrb[11].mxu1  ;;  %v1750_v36 = vmul.f32 -1.442695, %v672_v59 }
 0x302   :  { %1884 = vpow2.f32 %v1749_v63  ;;  %v1751_v40 = vmul.f32 -1.442695, %v674_v38 }
 0x303   :  { %1886 = vpow2.f32 %v1750_v36 }
 0x304   :  { %1888 = vpow2.f32 %v1751_v40 }
 0x305   :  { %1890 = vtanh.f32 %v673_v41  ;;  %v1756_v41 = vld [vmem:[%s2949_s0 + $0x30] sm:$0xff] }
 0x30c   :  { %v1885_v35 = vpop.eup %1884 }
 0x30d   :  { %v1887_v43 = vpop.eup %1886  ;;  %v678_v44 = vadd.f32 1.0, %v1885_v35  ;;  %v768_v35 = vunpack.c.l.bf16 %v1756_v41 }
 0x30e   :  { %v684_v45 = vadd.f32 1.0, %v1887_v43  ;;  %v1889_v46 = vpop.eup %1888  ;;  %v769_v43 = vunpack.c.h.bf16 %v1756_v41 }
 0x30f   :  { %1892 = vrcp.f32 %v678_v44  ;;  %v1891_v47 = vpop.eup %1890  ;;  %v691_v51 = vadd.f32 1.0, %v1889_v46 }
 0x310   :  { %1894 = vrcp.f32 %v684_v45 }
 0x311   :  { %1896 = vrcp.f32 %v691_v51 }
 0x319   :  { %v1893_v48 = vpop.eup %1892 }
 0x31a   :  { %v1895_v49 = vpop.eup %1894  ;;  %v695_v50 = vmul.f32 %v1893_v48, %v1891_v47  ;;  %v1757_v47 = vld [vmem:[%s2949_s0 + $0x38] sm:$0xff] }
 0x31b   :  { %v694_v52 = vmul.f32 %v1895_v49, %v2347_v62  ;;  %v1897_v54 = vpop.eup %1896 }
 0x31d   :  { %v2421_v53 = vadd.f32 %v695_v50, %v694_v52 }
 0x31f   :  { %1898 = vtanh.f32 %v2421_v53 }
 0x329   :  { %v1899_v55 = vpop.eup %1898 }
 0x32a   :  { %v698_v56 = vmul.f32 %v1899_v55, %v1897_v54 }
 0x32c   :  { %v700_v57 = vcombine.high %v698_v56, %v698_v56  ;;  %v707_v58 = vrot.slane %v698_v56, %v2274_v42  ;;  %v772_v59 = vpack.c.bf16 %v698_v56, %v698_v56  ;;  %v771_v56 = vunpack.c.h.bf16 %v1757_v47 }
 0x32e   :  { %v714_v60 = vrot.slane %v700_v57, %v2274_v42  ;;  %v715_v61 = vcombine.high %v707_v58, %v707_v58  ;;  %v723_v63 = vrot.slane %v707_v58, %v2274_v42  ;;  %1752 = vst.sshfl [vmem:[%s2950_s2 + $0x2] sm:$0x1 pattern:$0x73625140] %v707_v58  ;;  %806 = vmatmul.mubr.bf16.vlgmr.msra.gmra.mrb[12].mxu0 %v772_v59  ;;  %v770_v58 = vunpack.c.l.bf16 %v1757_v47 }
 0x32f   :  { %847 = vmatmul.mubr.bf16.vlgmr.msra.gmra.mrb[12].mxu1 %v772_v59  ;;  %958 = vmatpush1.bf16.msra.mxu0 %v2045_v2 }
 0x330   :  { %999 = vmatpush1.bf16.msra.mxu1 %v2073_v7  ;;  %v716_v62 = vcombine.high %v714_v60, %v714_v60  ;;  %v730_v33 = vrot.slane %v714_v60, %v2274_v42  ;;  %v737_v34 = vrot.slane %v715_v61, %v2274_v42  ;;  %v745_v36 = vcombine.high %v723_v63, %v723_v63 }
 0x331   :  { %1753 = vst.sshfl [vmem:[%s2950_s2 + $0xa] sm:$0x1 pattern:$0x73625140] %v715_v61  ;;  %959 = vmatprep.subr.bf16.mxu0 %v2051_v3  ;;  %1000 = vmatprep.subr.bf16.mxu1 %v2092_v10 }
 0x332   :  { %1754 = vst.sshfl [vmem:[%s2950_s2 + $0x22] sm:$0x1 pattern:$0x73625140] %v714_v60  ;;  %989 = vmatprep.mubr.bf16.mxu0 %v2012_v1  ;;  %v744_v37 = vrot.slane %v716_v62, %v2274_v42  ;;  %v746_v38 = vcombine.high %v730_v33, %v730_v33  ;;  %v747_v39 = vcombine.high %v737_v34, %v737_v34  ;;  %759 = vst [vmem:[%s2950_s2 + $0x12] sm:$0x1] %v745_v36 }
 0x333   :  { %1755 = vst.sshfl [vmem:[%s2950_s2 + $0x2a] sm:$0x1 pattern:$0x73625140] %v716_v62  ;;  %1030 = vmatprep.mubr.bf16.mxu1 %v2012_v1  ;;  %960 = vmatpush1.bf16.msra.mxu0 %v2057_v4 }
 0x334   :  { %1001 = vmatpush1.bf16.msra.mxu1 %v2097_v11  ;;  %v748_v40 = vcombine.high %v744_v37, %v744_v37  ;;  %760 = vst [vmem:[%s2950_s2 + $0x1a] sm:$0x1] %v747_v39  ;;  %763 = vst [vmem:[%s2950_s2 + $0x32] sm:$0x1] %v746_v38  ;;  %961 = vmatprep.subr.bf16.mxu0 %v2063_v5 }
 0x335   :  { %1002 = vmatprep.subr.bf16.mxu1 %v2114_v14 }
 0x336   :  { %764 = vst [vmem:[%s2950_s2 + $0x3a] sm:$0x1] %v748_v40 }
 0x337   :  { %962 = vmatpush1.bf16.msra.mxu0 %v2079_v8 }
 0x338   :  { %1003 = vmatpush1.bf16.msra.mxu1 %v2121_v15  ;;  %963 = vmatprep.subr.bf16.mxu0 %v2086_v9 }
 0x339   :  { %1004 = vmatprep.subr.bf16.mxu1 %v2127_v16 }
 0x33b   :  { %964 = vmatpush1.bf16.msra.mxu0 %v2104_v12 }
 0x33c   :  { %1005 = vmatpush1.bf16.msra.mxu1 %v2145_v19  ;;  %965 = vmatprep.subr.bf16.mxu0 %v2109_v13 }
 0x33d   :  { %1006 = vmatprep.subr.bf16.mxu1 %v2151_v20 }
 0x33f   :  { %966 = vmatpush1.bf16.msra.mxu0 %v2133_v17 }
 0x340   :  { %1007 = vmatpush1.bf16.msra.mxu1 %v2169_v23  ;;  %967 = vmatprep.subr.bf16.mxu0 %v2139_v18 }
 0x341   :  { %1008 = vmatprep.subr.bf16.mxu1 %v2175_v24 }
 0x343   :  { %968 = vmatpush1.bf16.msra.mxu0 %v2157_v21 }
 0x344   :  { %1009 = vmatpush1.bf16.msra.mxu1 %v2193_v27  ;;  %969 = vmatprep.subr.bf16.mxu0 %v2162_v22 }
 0x345   :  { %1010 = vmatprep.subr.bf16.mxu1 %v2199_v28 }
 0x347   :  { %970 = vmatpush1.bf16.msra.mxu0 %v2181_v25 }
 0x348   :  { %1011 = vmatpush1.bf16.msra.mxu1 %v2212_v30  ;;  %971 = vmatprep.subr.bf16.mxu0 %v2187_v26 }
 0x349   :  { %1012 = vmatprep.subr.bf16.mxu1 %v2218_v31 }
 0x34b   :  { %972 = vmatpush1.bf16.msra.mxu0 %v2205_v29 }
 0x34c   :  { %1013 = vmatpush1.bf16.msra.mxu1 %v2225_v32  ;;  %1141 = vmatprep.subr.bf16.mxu0 %v2038_v0 }
 0x34d   :  { %1182 = vmatprep.subr.bf16.mxu1 %v2068_v6 }
 0x401   :  { %v807_v44 = vpop.f32.mrb[12].mxu0 }
 0x402   :  { %v848_v45 = vpop.f32.mrb[12].mxu1  ;;  %v855_v46 = vadd.f32 %v807_v44, %v768_v35  ;;  %v809_v48 = vpop.f32.mrb[13].mxu0 }
 0x403   :  { %v850_v49 = vpop.f32.mrb[13].mxu1  ;;  %v856_v50 = vadd.f32 %v809_v48, %v769_v43  ;;  %v811_v51 = vpop.f32.mrb[14].mxu0  ;;  %v857_v60 = vadd.f32 %v848_v45, %v770_v58 }
 0x404   :  { %v852_v0 = vpop.f32.mrb[14].mxu1  ;;  %v1758_v52 = vmul.f32 -1.442695, %v855_v46  ;;  %v812_v6 = vpop.f32.mrb[15].mxu0  ;;  %v858_v57 = vadd.f32 %v850_v49, %v771_v56 }
 0x405   :  { %v853_v54 = vpop.f32.mrb[15].mxu1  ;;  %v1759_v55 = vmul.f32 -1.442695, %v856_v50 }
 0x406   :  { %1900 = vpow2.f32 %v1758_v52  ;;  %v1760_v59 = vmul.f32 -1.442695, %v858_v57 }
 0x407   :  { %1902 = vpow2.f32 %v1759_v55 }
 0x408   :  { %1904 = vpow2.f32 %v1760_v59 }
 0x409   :  { %1906 = vtanh.f32 %v857_v60 }
 0x410   :  { %v1901_v61 = vpop.eup %1900 }
 0x411   :  { %v1903_v63 = vpop.eup %1902  ;;  %v862_v62 = vadd.f32 1.0, %v1901_v61 }
 0x412   :  { %v868_v33 = vadd.f32 1.0, %v1903_v63  ;;  %v1905_v34 = vpop.eup %1904 }
 0x413   :  { %1908 = vrcp.f32 %v862_v62  ;;  %v1907_v36 = vpop.eup %1906  ;;  %v875_v40 = vadd.f32 1.0, %v1905_v34 }
 0x414   :  { %1910 = vrcp.f32 %v868_v33 }
 0x415   :  { %1912 = vrcp.f32 %v875_v40 }
 0x41d   :  { %v1909_v37 = vpop.eup %1908 }
 0x41e   :  { %v1911_v38 = vpop.eup %1910  ;;  %v879_v39 = vmul.f32 %v1909_v37, %v1907_v36 }
 0x41f   :  { %v878_v41 = vmul.f32 %v1911_v38, %v2421_v53  ;;  %v1913_v43 = vpop.eup %1912 }
 0x421   :  { %v2495_v35 = vadd.f32 %v879_v39, %v878_v41 }
 0x423   :  { %1914 = vtanh.f32 %v2495_v35 }
 0x42d   :  { %v1915_v44 = vpop.eup %1914 }
 0x42e   :  { %v882_v45 = vmul.f32 %v1915_v44, %v1913_v43  ;;  %v2597_v43 = vld [vmem:[%s2948_s1 + $0x8] ss:$16 sps:$4 sm:$0xff]  }
 0x430   :  { %v884_v46 = vcombine.high %v882_v45, %v882_v45  ;;  %v891_v47 = vrot.slane %v882_v45, %v2274_v42  ;;  %v956_v48 = vpack.c.bf16 %v882_v45, %v882_v45 }
 0x432   :  { %v898_v49 = vrot.slane %v884_v46, %v2274_v42  ;;  %v899_v50 = vcombine.high %v891_v47, %v891_v47  ;;  %v907_v51 = vrot.slane %v891_v47, %v2274_v42  ;;  %1761 = vst.sshfl [vmem:[%s2950_s2 + $0x3] sm:$0x1 pattern:$0x73625140] %v891_v47  ;;  %990 = vmatmul.mubr.bf16.vlgmr.msra.gmra.mrb[16].mxu0 %v956_v48 }
 0x433   :  { %1031 = vmatmul.mubr.bf16.vlgmr.msra.gmra.mrb[16].mxu1 %v956_v48  ;;  %1142 = vmatpush1.bf16.msra.mxu0 %v2045_v2  ;;  %v2611_v48 = vld [vmem:[%s2948_s1 + $0x24] ss:$16 sps:$4 sm:$0xff]  }
 0x434   :  { %1183 = vmatpush1.bf16.msra.mxu1 %v2073_v7  ;;  %v900_v53 = vcombine.high %v898_v49, %v898_v49  ;;  %v914_v0 = vrot.slane %v898_v49, %v2274_v42  ;;  %v921_v52 = vrot.slane %v899_v50, %v2274_v42  ;;  %v929_v6 = vcombine.high %v907_v51, %v907_v51 }
 0x435   :  { %1762 = vst.sshfl [vmem:[%s2950_s2 + $0xb] sm:$0x1 pattern:$0x73625140] %v899_v50  ;;  %1143 = vmatprep.subr.bf16.mxu0 %v2051_v3  ;;  %1184 = vmatprep.subr.bf16.mxu1 %v2092_v10 }
 0x436   :  { %1763 = vst.sshfl [vmem:[%s2950_s2 + $0x23] sm:$0x1 pattern:$0x73625140] %v898_v49  ;;  %1173 = vmatprep.mubr.bf16.mxu0 %v2012_v1  ;;  %v928_v2 = vrot.slane %v900_v53, %v2274_v42  ;;  %v930_v7 = vcombine.high %v914_v0, %v914_v0  ;;  %v931_v54 = vcombine.high %v921_v52, %v921_v52  ;;  %943 = vst [vmem:[%s2950_s2 + $0x13] sm:$0x1] %v929_v6 }
 0x437   :  { %1764 = vst.sshfl [vmem:[%s2950_s2 + $0x2b] sm:$0x1 pattern:$0x73625140] %v900_v53  ;;  %1214 = vmatprep.mubr.bf16.mxu1 %v2012_v1  ;;  %1144 = vmatpush1.bf16.msra.mxu0 %v2057_v4  ;;  %v2563_v4 = vld [vmem:[%s2948_s1 + $0x4] ss:$16 sps:$4 sm:$0xff]  }
 0x438   :  { %1185 = vmatpush1.bf16.msra.mxu1 %v2097_v11  ;;  %v932_v3 = vcombine.high %v928_v2, %v928_v2  ;;  %944 = vst [vmem:[%s2950_s2 + $0x1b] sm:$0x1] %v931_v54  ;;  %947 = vst [vmem:[%s2950_s2 + $0x33] sm:$0x1] %v930_v7  ;;  %1145 = vmatprep.subr.bf16.mxu0 %v2063_v5  ;;  %v2569_v5 = vld [vmem:[%s2948_s1 + $0xc] ss:$16 sps:$4 sm:$0xff]  }
 0x439   :  { %1186 = vmatprep.subr.bf16.mxu1 %v2114_v14  ;;  %v1766_v14 = vld [vmem:[%s2949_s0 + $0x48] sm:$0xff]  ;;  %v2632_v0 = vld [vmem:[%s2948_s1 + $0x20] ss:$16 sps:$4 sm:$0xff]   ;;  %v2650_v2 = vld [vmem:[%s2948_s1 + $0x44] ss:$16 sps:$4 sm:$0xff]  }
 0x43a   :  { %948 = vst [vmem:[%s2950_s2 + $0x3b] sm:$0x1] %v932_v3  ;;  %v2617_v49 = vld [vmem:[%s2948_s1 + $0x2c] ss:$16 sps:$4 sm:$0xff]   ;;  %v2638_v52 = vld [vmem:[%s2948_s1 + $0x28] ss:$16 sps:$4 sm:$0xff]  }
 0x43b   :  { %1146 = vmatpush1.bf16.msra.mxu0 %v2079_v8  ;;  %v1765_v8 = vld [vmem:[%s2949_s0 + $0x40] sm:$0xff]  ;;  %v2656_v7 = vld [vmem:[%s2948_s1 + $0x4c] ss:$16 sps:$4 sm:$0xff]   ;;  %v2671_v3 = vld [vmem:[%s2948_s1 + $0x48] ss:$16 sps:$4 sm:$0xff]  }
 0x43c   :  { %1187 = vmatpush1.bf16.msra.mxu1 %v2121_v15  ;;  %1147 = vmatprep.subr.bf16.mxu0 %v2086_v9  ;;  %v952_v9 = vunpack.c.l.bf16 %v1765_v8  ;;  %v953_v10 = vunpack.c.h.bf16 %v1765_v8  ;;  %v2665_v54 = vld [vmem:[%s2948_s1 + $0x40] ss:$16 sps:$4 sm:$0xff]   ;;  %v2677_v8 = vld [vmem:[%s2948_s1 + $0x64] ss:$16 sps:$4 sm:$0xff]  }
 0x43d   :  { %1188 = vmatprep.subr.bf16.mxu1 %v2127_v16 }
 0x43f   :  { %1148 = vmatpush1.bf16.msra.mxu0 %v2104_v12 }
 0x440   :  { %1189 = vmatpush1.bf16.msra.mxu1 %v2145_v19  ;;  %1149 = vmatprep.subr.bf16.mxu0 %v2109_v13 }
 0x441   :  { %1190 = vmatprep.subr.bf16.mxu1 %v2151_v20 }
 0x443   :  { %1150 = vmatpush1.bf16.msra.mxu0 %v2133_v17 }
 0x444   :  { %1191 = vmatpush1.bf16.msra.mxu1 %v2169_v23  ;;  %1151 = vmatprep.subr.bf16.mxu0 %v2139_v18 }
 0x445   :  { %1192 = vmatprep.subr.bf16.mxu1 %v2175_v24  ;;  %v955_v24 = vunpack.c.h.bf16 %v1766_v14 }
 0x447   :  { %1152 = vmatpush1.bf16.msra.mxu0 %v2157_v21 }
 0x448   :  { %1193 = vmatpush1.bf16.msra.mxu1 %v2193_v27  ;;  %1153 = vmatprep.subr.bf16.mxu0 %v2162_v22 }
 0x449   :  { %1194 = vmatprep.subr.bf16.mxu1 %v2199_v28 }
 0x44b   :  { %1154 = vmatpush1.bf16.msra.mxu0 %v2181_v25 }
 0x44c   :  { %1195 = vmatpush1.bf16.msra.mxu1 %v2212_v30  ;;  %1155 = vmatprep.subr.bf16.mxu0 %v2187_v26  ;;  %v954_v26 = vunpack.c.l.bf16 %v1766_v14  ;;  %v2713_v14 = vld [vmem:[%s2948_s1 + $0x80] ss:$16 sps:$4 sm:$0xff]  }
 0x44d   :  { %1196 = vmatprep.subr.bf16.mxu1 %v2218_v31 }
 0x44f   :  { %1156 = vmatpush1.bf16.msra.mxu0 %v2205_v29 }
 0x450   :  { %1197 = vmatpush1.bf16.msra.mxu1 %v2225_v32  ;;  %1325 = vmatprep.subr.bf16.mxu0 %v2563_v4 }
 0x451   :  { %1366 = vmatprep.subr.bf16.mxu1 %v2569_v5 }
 0x505   :  { %v991_v11 = vpop.f32.mrb[16].mxu0 }
 0x506   :  { %v1032_v12 = vpop.f32.mrb[16].mxu1  ;;  %v1039_v13 = vadd.f32 %v991_v11, %v952_v9  ;;  %v993_v15 = vpop.f32.mrb[17].mxu0  ;;  %v2683_v9 = vld [vmem:[%s2948_s1 + $0x6c] ss:$16 sps:$4 sm:$0xff]   ;;  %v2695_v11 = vld [vmem:[%s2948_s1 + $0x68] ss:$16 sps:$4 sm:$0xff]  }
 0x507   :  { %v1034_v16 = vpop.f32.mrb[17].mxu1  ;;  %v1040_v17 = vadd.f32 %v993_v15, %v953_v10  ;;  %v995_v18 = vpop.f32.mrb[18].mxu0  ;;  %v1041_v28 = vadd.f32 %v1032_v12, %v954_v26  ;;  %v2689_v10 = vld [vmem:[%s2948_s1 + $0x60] ss:$16 sps:$4 sm:$0xff]   ;;  %v2701_v12 = vld [vmem:[%s2948_s1 + $0x84] ss:$16 sps:$4 sm:$0xff]  }
 0x508   :  { %v1036_v19 = vpop.f32.mrb[18].mxu1  ;;  %v1767_v20 = vmul.f32 -1.442695, %v1039_v13  ;;  %v996_v21 = vpop.f32.mrb[19].mxu0  ;;  %v1042_v25 = vadd.f32 %v1034_v16, %v955_v24  ;;  %v2707_v13 = vld [vmem:[%s2948_s1 + $0x8c] ss:$16 sps:$4 sm:$0xff]  }
 0x509   :  { %v1037_v22 = vpop.f32.mrb[19].mxu1  ;;  %v1768_v23 = vmul.f32 -1.442695, %v1040_v17  ;;  %v2719_v15 = vld [vmem:[%s2948_s1 + $0x88] ss:$16 sps:$4 sm:$0xff]  }
 0x50a   :  { %1916 = vpow2.f32 %v1767_v20  ;;  %v1769_v27 = vmul.f32 -1.442695, %v1042_v25  ;;  %v2725_v16 = vld [vmem:[%s2948_s1 + $0xa4] ss:$16 sps:$4 sm:$0xff]   ;;  %v2731_v17 = vld [vmem:[%s2948_s1 + $0xac] ss:$16 sps:$4 sm:$0xff]  }
 0x50b   :  { %1918 = vpow2.f32 %v1768_v23  ;;  %v2737_v18 = vld [vmem:[%s2948_s1 + $0xa0] ss:$16 sps:$4 sm:$0xff]   ;;  %v2743_v19 = vld [vmem:[%s2948_s1 + $0xa8] ss:$16 sps:$4 sm:$0xff]   ;;  %v2749_v20 = vld [vmem:[%s2948_s1 + $0xc4] ss:$16 sps:$4 sm:$0xff]  }
 0x50c   :  { %1920 = vpow2.f32 %v1769_v27  ;;  %v2755_v21 = vld [vmem:[%s2948_s1 + $0xcc] ss:$16 sps:$4 sm:$0xff]   ;;  %v2761_v22 = vld [vmem:[%s2948_s1 + $0xc0] ss:$16 sps:$4 sm:$0xff]   ;;  %v2767_v23 = vld [vmem:[%s2948_s1 + $0xc8] ss:$16 sps:$4 sm:$0xff]  }
 0x50d   :  { %1922 = vtanh.f32 %v1041_v28  ;;  %v2773_v24 = vld [vmem:[%s2948_s1 + $0xe4] ss:$16 sps:$4 sm:$0xff]   ;;  %v2779_v25 = vld [vmem:[%s2948_s1 + $0xec] ss:$16 sps:$4 sm:$0xff]   ;;  %v2785_v26 = vld [vmem:[%s2948_s1 + $0xe0] ss:$16 sps:$4 sm:$0xff]  }
 0x50e   :  { %v2791_v27 = vld [vmem:[%s2948_s1 + $0xe8] ss:$16 sps:$4 sm:$0xff]   ;;  %v1774_v28 = vld [vmem:[%s2949_s0 + $0x50] sm:$0xff] }
 0x514   :  { %v1917_v29 = vpop.eup %1916 }
 0x515   :  { %v1919_v30 = vpop.eup %1918  ;;  %v1046_v31 = vadd.f32 1.0, %v1917_v29  ;;  %v1136_v29 = vunpack.c.l.bf16 %v1774_v28 }
 0x516   :  { %v1052_v32 = vadd.f32 1.0, %v1919_v30  ;;  %v1921_v55 = vpop.eup %1920  ;;  %v1137_v30 = vunpack.c.h.bf16 %v1774_v28 }
 0x517   :  { %1924 = vrcp.f32 %v1046_v31  ;;  %v1923_v56 = vpop.eup %1922  ;;  %v1059_v60 = vadd.f32 1.0, %v1921_v55 }
 0x518   :  { %1926 = vrcp.f32 %v1052_v32 }
 0x519   :  { %1928 = vrcp.f32 %v1059_v60 }
 0x521   :  { %v1925_v57 = vpop.eup %1924 }
 0x522   :  { %v1927_v58 = vpop.eup %1926  ;;  %v1063_v59 = vmul.f32 %v1925_v57, %v1923_v56  ;;  %v1775_v56 = vld [vmem:[%s2949_s0 + $0x58] sm:$0xff] }
 0x523   :  { %v1062_v61 = vmul.f32 %v1927_v58, %v2495_v35  ;;  %v1929_v62 = vpop.eup %1928  ;;  %v2591_v35 = vld [vmem:[%s2948_s1] ss:$16 sps:$4 sm:$0xff]  }
 0x525   :  { %v2579_v63 = vadd.f32 %v1063_v59, %v1062_v61 }
 0x527   :  { %1930 = vtanh.f32 %v2579_v63 }
 0x531   :  { %v1931_v33 = vpop.eup %1930 }
 0x532   :  { %v1066_v34 = vmul.f32 %v1931_v33, %v1929_v62 }
 0x534   :  { %v1068_v36 = vcombine.high %v1066_v34, %v1066_v34  ;;  %v1075_v37 = vrot.slane %v1066_v34, %v2274_v42  ;;  %v1140_v38 = vpack.c.bf16 %v1066_v34, %v1066_v34  ;;  %v1139_v34 = vunpack.c.h.bf16 %v1775_v56 }
 0x536   :  { %v1082_v39 = vrot.slane %v1068_v36, %v2274_v42  ;;  %v1083_v40 = vcombine.high %v1075_v37, %v1075_v37  ;;  %v1091_v41 = vrot.slane %v1075_v37, %v2274_v42  ;;  %1770 = vst.sshfl [vmem:[%s2950_s2 + $0x4] sm:$0x1 pattern:$0x73625140] %v1075_v37  ;;  %1174 = vmatmul.mubr.bf16.vlgmr.msra.gmra.mrb[20].mxu0 %v1140_v38  ;;  %v1138_v37 = vunpack.c.l.bf16 %v1775_v56 }
 0x537   :  { %1215 = vmatmul.mubr.bf16.vlgmr.msra.gmra.mrb[20].mxu1 %v1140_v38  ;;  %1326 = vmatpush1.bf16.msra.mxu0 %v2591_v35 }
 0x538   :  { %1367 = vmatpush1.bf16.msra.mxu1 %v2597_v43  ;;  %v1084_v44 = vcombine.high %v1082_v39, %v1082_v39  ;;  %v1098_v45 = vrot.slane %v1082_v39, %v2274_v42  ;;  %v1105_v46 = vrot.slane %v1083_v40, %v2274_v42  ;;  %v1113_v47 = vcombine.high %v1091_v41, %v1091_v41 }
 0x539   :  { %1771 = vst.sshfl [vmem:[%s2950_s2 + $0xc] sm:$0x1 pattern:$0x73625140] %v1083_v40  ;;  %1327 = vmatprep.subr.bf16.mxu0 %v2611_v48  ;;  %1368 = vmatprep.subr.bf16.mxu1 %v2617_v49 }
 0x53a   :  { %1772 = vst.sshfl [vmem:[%s2950_s2 + $0x24] sm:$0x1 pattern:$0x73625140] %v1082_v39  ;;  %1357 = vmatprep.mubr.bf16.mxu0 %v2012_v1  ;;  %v1112_v50 = vrot.slane %v1084_v44, %v2274_v42  ;;  %v1114_v51 = vcombine.high %v1098_v45, %v1098_v45  ;;  %v1115_v53 = vcombine.high %v1105_v46, %v1105_v46  ;;  %1127 = vst [vmem:[%s2950_s2 + $0x14] sm:$0x1] %v1113_v47 }
 0x53b   :  { %1773 = vst.sshfl [vmem:[%s2950_s2 + $0x2c] sm:$0x1 pattern:$0x73625140] %v1084_v44  ;;  %1398 = vmatprep.mubr.bf16.mxu1 %v2012_v1  ;;  %1328 = vmatpush1.bf16.msra.mxu0 %v2632_v0 }
 0x53c   :  { %1369 = vmatpush1.bf16.msra.mxu1 %v2638_v52  ;;  %v1116_v6 = vcombine.high %v1112_v50, %v1112_v50  ;;  %1128 = vst [vmem:[%s2950_s2 + $0x1c] sm:$0x1] %v1115_v53  ;;  %1131 = vst [vmem:[%s2950_s2 + $0x34] sm:$0x1] %v1114_v51  ;;  %1329 = vmatprep.subr.bf16.mxu0 %v2650_v2 }
 0x53d   :  { %1370 = vmatprep.subr.bf16.mxu1 %v2656_v7 }
 0x53e   :  { %1132 = vst [vmem:[%s2950_s2 + $0x3c] sm:$0x1] %v1116_v6 }
 0x53f   :  { %1330 = vmatpush1.bf16.msra.mxu0 %v2665_v54 }
 0x540   :  { %1371 = vmatpush1.bf16.msra.mxu1 %v2671_v3  ;;  %1331 = vmatprep.subr.bf16.mxu0 %v2677_v8 }
 0x541   :  { %1372 = vmatprep.subr.bf16.mxu1 %v2683_v9 }
 0x543   :  { %1332 = vmatpush1.bf16.msra.mxu0 %v2689_v10 }
 0x544   :  { %1373 = vmatpush1.bf16.msra.mxu1 %v2695_v11  ;;  %1333 = vmatprep.subr.bf16.mxu0 %v2701_v12 }
 0x545   :  { %1374 = vmatprep.subr.bf16.mxu1 %v2707_v13 }
 0x547   :  { %1334 = vmatpush1.bf16.msra.mxu0 %v2713_v14 }
 0x548   :  { %1375 = vmatpush1.bf16.msra.mxu1 %v2719_v15  ;;  %1335 = vmatprep.subr.bf16.mxu0 %v2725_v16 }
 0x549   :  { %1376 = vmatprep.subr.bf16.mxu1 %v2731_v17 }
 0x54b   :  { %1336 = vmatpush1.bf16.msra.mxu0 %v2737_v18 }
 0x54c   :  { %1377 = vmatpush1.bf16.msra.mxu1 %v2743_v19  ;;  %1337 = vmatprep.subr.bf16.mxu0 %v2749_v20 }
 0x54d   :  { %1378 = vmatprep.subr.bf16.mxu1 %v2755_v21 }
 0x54f   :  { %1338 = vmatpush1.bf16.msra.mxu0 %v2761_v22 }
 0x550   :  { %1379 = vmatpush1.bf16.msra.mxu1 %v2767_v23  ;;  %1339 = vmatprep.subr.bf16.mxu0 %v2773_v24 }
 0x551   :  { %1380 = vmatprep.subr.bf16.mxu1 %v2779_v25 }
 0x553   :  { %1340 = vmatpush1.bf16.msra.mxu0 %v2785_v26 }
 0x554   :  { %1381 = vmatpush1.bf16.msra.mxu1 %v2791_v27  ;;  %1509 = vmatprep.subr.bf16.mxu0 %v2563_v4 }
 0x555   :  { %1550 = vmatprep.subr.bf16.mxu1 %v2569_v5 }
 0x609   :  { %v1175_v31 = vpop.f32.mrb[20].mxu0 }
 0x60a   :  { %v1216_v32 = vpop.f32.mrb[20].mxu1  ;;  %v1223_v55 = vadd.f32 %v1175_v31, %v1136_v29  ;;  %v1177_v57 = vpop.f32.mrb[21].mxu0 }
 0x60b   :  { %v1218_v58 = vpop.f32.mrb[21].mxu1  ;;  %v1224_v59 = vadd.f32 %v1177_v57, %v1137_v30  ;;  %v1179_v60 = vpop.f32.mrb[22].mxu0  ;;  %v1225_v39 = vadd.f32 %v1216_v32, %v1138_v37 }
 0x60c   :  { %v1220_v4 = vpop.f32.mrb[22].mxu1  ;;  %v1776_v61 = vmul.f32 -1.442695, %v1223_v55  ;;  %v1180_v5 = vpop.f32.mrb[23].mxu0  ;;  %v1226_v36 = vadd.f32 %v1218_v58, %v1139_v34 }
 0x60d   :  { %v1221_v62 = vpop.f32.mrb[23].mxu1  ;;  %v1777_v33 = vmul.f32 -1.442695, %v1224_v59 }
 0x60e   :  { %1932 = vpow2.f32 %v1776_v61  ;;  %v1778_v38 = vmul.f32 -1.442695, %v1226_v36 }
 0x60f   :  { %1934 = vpow2.f32 %v1777_v33 }
 0x610   :  { %1936 = vpow2.f32 %v1778_v38 }
 0x611   :  { %1938 = vtanh.f32 %v1225_v39 }
 0x618   :  { %v1933_v40 = vpop.eup %1932 }
 0x619   :  { %v1935_v41 = vpop.eup %1934  ;;  %v1230_v44 = vadd.f32 1.0, %v1933_v40 }
 0x61a   :  { %v1236_v45 = vadd.f32 1.0, %v1935_v41  ;;  %v1937_v46 = vpop.eup %1936 }
 0x61b   :  { %1940 = vrcp.f32 %v1230_v44  ;;  %v1939_v47 = vpop.eup %1938  ;;  %v1243_v6 = vadd.f32 1.0, %v1937_v46 }
 0x61c   :  { %1942 = vrcp.f32 %v1236_v45 }
 0x61d   :  { %1944 = vrcp.f32 %v1243_v6 }
 0x625   :  { %v1941_v50 = vpop.eup %1940 }
 0x626   :  { %v1943_v51 = vpop.eup %1942  ;;  %v1247_v53 = vmul.f32 %v1941_v50, %v1939_v47 }
 0x627   :  { %v1246_v28 = vmul.f32 %v1943_v51, %v2579_v63  ;;  %v1945_v30 = vpop.eup %1944 }
 0x629   :  { %v2803_v29 = vadd.f32 %v1247_v53, %v1246_v28 }
 0x62b   :  { %1946 = vtanh.f32 %v2803_v29 }
 0x635   :  { %v1947_v31 = vpop.eup %1946 }
 0x636   :  { %v1250_v32 = vmul.f32 %v1947_v31, %v1945_v30 }
 0x638   :  { %v1252_v55 = vcombine.high %v1250_v32, %v1250_v32  ;;  %v1259_v56 = vrot.slane %v1250_v32, %v2274_v42  ;;  %v1324_v57 = vpack.c.bf16 %v1250_v32, %v1250_v32 }
 0x63a   :  { %v1266_v58 = vrot.slane %v1252_v55, %v2274_v42  ;;  %v1267_v59 = vcombine.high %v1259_v56, %v1259_v56  ;;  %v1275_v60 = vrot.slane %v1259_v56, %v2274_v42  ;;  %1779 = vst.sshfl [vmem:[%s2950_s2 + $0x5] sm:$0x1 pattern:$0x73625140] %v1259_v56  ;;  %1358 = vmatmul.mubr.bf16.vlgmr.msra.gmra.mrb[24].mxu0 %v1324_v57  ;;  %v1792_v56 = vld [vmem:[%s2949_s0 + $0x70] sm:$0xff] }
 0x63b   :  { %1399 = vmatmul.mubr.bf16.vlgmr.msra.gmra.mrb[24].mxu1 %v1324_v57  ;;  %1510 = vmatpush1.bf16.msra.mxu0 %v2591_v35  ;;  %v1504_v57 = vunpack.c.l.bf16 %v1792_v56 }
 0x63c   :  { %1551 = vmatpush1.bf16.msra.mxu1 %v2597_v43  ;;  %v1268_v63 = vcombine.high %v1266_v58, %v1266_v58  ;;  %v1282_v4 = vrot.slane %v1266_v58, %v2274_v42  ;;  %v1289_v61 = vrot.slane %v1267_v59, %v2274_v42  ;;  %v1297_v5 = vcombine.high %v1275_v60, %v1275_v60 }
 0x63d   :  { %1780 = vst.sshfl [vmem:[%s2950_s2 + $0xd] sm:$0x1 pattern:$0x73625140] %v1267_v59  ;;  %1511 = vmatprep.subr.bf16.mxu0 %v2611_v48  ;;  %1552 = vmatprep.subr.bf16.mxu1 %v2617_v49 }
 0x63e   :  { %1781 = vst.sshfl [vmem:[%s2950_s2 + $0x25] sm:$0x1 pattern:$0x73625140] %v1266_v58  ;;  %1541 = vmatprep.mubr.bf16.mxu0 %v2012_v1  ;;  %v1296_v35 = vrot.slane %v1268_v63, %v2274_v42  ;;  %v1298_v43 = vcombine.high %v1282_v4, %v1282_v4  ;;  %v1299_v62 = vcombine.high %v1289_v61, %v1289_v61  ;;  %1311 = vst [vmem:[%s2950_s2 + $0x15] sm:$0x1] %v1297_v5 }
 0x63f   :  { %1782 = vst.sshfl [vmem:[%s2950_s2 + $0x2d] sm:$0x1 pattern:$0x73625140] %v1268_v63  ;;  %1582 = vmatprep.mubr.bf16.mxu1 %v2012_v1  ;;  %1512 = vmatpush1.bf16.msra.mxu0 %v2632_v0  ;;  %v1783_v1 = vld [vmem:[%s2949_s0 + $0x60] sm:$0xff]  ;;  %v1505_v58 = vunpack.c.h.bf16 %v1792_v56  ;;  %v1793_v4 = vld [vmem:[%s2949_s0 + $0x78] sm:$0xff] }
 0x640   :  { %1553 = vmatpush1.bf16.msra.mxu1 %v2638_v52  ;;  %v1300_v48 = vcombine.high %v1296_v35, %v1296_v35  ;;  %1312 = vst [vmem:[%s2950_s2 + $0x1d] sm:$0x1] %v1299_v62  ;;  %1315 = vst [vmem:[%s2950_s2 + $0x35] sm:$0x1] %v1298_v43  ;;  %1513 = vmatprep.subr.bf16.mxu0 %v2650_v2  ;;  %v1320_v49 = vunpack.c.l.bf16 %v1783_v1  ;;  %v1321_v0 = vunpack.c.h.bf16 %v1783_v1 }
 0x641   :  { %1554 = vmatprep.subr.bf16.mxu1 %v2656_v7 }
 0x642   :  { %1316 = vst [vmem:[%s2950_s2 + $0x3d] sm:$0x1] %v1300_v48 }
 0x643   :  { %1514 = vmatpush1.bf16.msra.mxu0 %v2665_v54  ;;  %v1784_v54 = vld [vmem:[%s2949_s0 + $0x68] sm:$0xff] }
 0x644   :  { %1555 = vmatpush1.bf16.msra.mxu1 %v2671_v3  ;;  %1515 = vmatprep.subr.bf16.mxu0 %v2677_v8 }
 0x645   :  { %1556 = vmatprep.subr.bf16.mxu1 %v2683_v9 }
 0x647   :  { %1516 = vmatpush1.bf16.msra.mxu0 %v2689_v10 }
 0x648   :  { %1557 = vmatpush1.bf16.msra.mxu1 %v2695_v11  ;;  %1517 = vmatprep.subr.bf16.mxu0 %v2701_v12 }
 0x649   :  { %1558 = vmatprep.subr.bf16.mxu1 %v2707_v13 }
 0x64b   :  { %1518 = vmatpush1.bf16.msra.mxu0 %v2713_v14 }
 0x64c   :  { %1559 = vmatpush1.bf16.msra.mxu1 %v2719_v15  ;;  %1519 = vmatprep.subr.bf16.mxu0 %v2725_v16  ;;  %v1323_v16 = vunpack.c.h.bf16 %v1784_v54 }
 0x64d   :  { %1560 = vmatprep.subr.bf16.mxu1 %v2731_v17 }
 0x64f   :  { %1520 = vmatpush1.bf16.msra.mxu0 %v2737_v18  ;;  %v1322_v18 = vunpack.c.l.bf16 %v1784_v54 }
 0x650   :  { %1561 = vmatpush1.bf16.msra.mxu1 %v2743_v19  ;;  %1521 = vmatprep.subr.bf16.mxu0 %v2749_v20 }
 0x651   :  { %1562 = vmatprep.subr.bf16.mxu1 %v2755_v21 }
 0x653   :  { %1522 = vmatpush1.bf16.msra.mxu0 %v2761_v22 }
 0x654   :  { %1563 = vmatpush1.bf16.msra.mxu1 %v2767_v23  ;;  %1523 = vmatprep.subr.bf16.mxu0 %v2773_v24 }
 0x655   :  { %1564 = vmatprep.subr.bf16.mxu1 %v2779_v25 }
 0x657   :  { %1524 = vmatpush1.bf16.msra.mxu0 %v2785_v26 }
 0x658   :  { %1565 = vmatpush1.bf16.msra.mxu1 %v2791_v27 }
 0x70d   :  { %v1359_v52 = vpop.f32.mrb[24].mxu0 }
 0x70e   :  { %v1400_v2 = vpop.f32.mrb[24].mxu1  ;;  %v1407_v7 = vadd.f32 %v1359_v52, %v1320_v49  ;;  %v1361_v3 = vpop.f32.mrb[25].mxu0  ;;  %v1507_v52 = vunpack.c.h.bf16 %v1793_v4 }
 0x70f   :  { %v1402_v8 = vpop.f32.mrb[25].mxu1  ;;  %v1408_v9 = vadd.f32 %v1361_v3, %v1321_v0  ;;  %v1363_v10 = vpop.f32.mrb[26].mxu0  ;;  %v1409_v20 = vadd.f32 %v1400_v2, %v1322_v18 }
 0x710   :  { %v1404_v11 = vpop.f32.mrb[26].mxu1  ;;  %v1785_v12 = vmul.f32 -1.442695, %v1407_v7  ;;  %v1364_v13 = vpop.f32.mrb[27].mxu0  ;;  %v1410_v17 = vadd.f32 %v1402_v8, %v1323_v16  ;;  %v1506_v7 = vunpack.c.l.bf16 %v1793_v4 }
 0x711   :  { %v1405_v14 = vpop.f32.mrb[27].mxu1  ;;  %v1786_v15 = vmul.f32 -1.442695, %v1408_v9 }
 0x712   :  { %1948 = vpow2.f32 %v1785_v12  ;;  %v1787_v19 = vmul.f32 -1.442695, %v1410_v17 }
 0x713   :  { %1950 = vpow2.f32 %v1786_v15 }
 0x714   :  { %1952 = vpow2.f32 %v1787_v19 }
 0x715   :  { %1954 = vtanh.f32 %v1409_v20 }
 0x71c   :  { %v1949_v21 = vpop.eup %1948 }
 0x71d   :  { %v1951_v22 = vpop.eup %1950  ;;  %v1414_v23 = vadd.f32 1.0, %v1949_v21 }
 0x71e   :  { %v1420_v24 = vadd.f32 1.0, %v1951_v22  ;;  %v1953_v25 = vpop.eup %1952 }
 0x71f   :  { %1956 = vrcp.f32 %v1414_v23  ;;  %v1955_v26 = vpop.eup %1954  ;;  %v1427_v36 = vadd.f32 1.0, %v1953_v25 }
 0x720   :  { %1958 = vrcp.f32 %v1420_v24 }
 0x721   :  { %1960 = vrcp.f32 %v1427_v36 }
 0x729   :  { %v1957_v27 = vpop.eup %1956 }
 0x72a   :  { %v1959_v33 = vpop.eup %1958  ;;  %v1431_v34 = vmul.f32 %v1957_v27, %v1955_v26 }
 0x72b   :  { %v1430_v37 = vmul.f32 %v1959_v33, %v2803_v29  ;;  %v1961_v39 = vpop.eup %1960 }
 0x72d   :  { %v2875_v38 = vadd.f32 %v1431_v34, %v1430_v37 }
 0x72f   :  { %1962 = vtanh.f32 %v2875_v38 }
 0x739   :  { %v1963_v40 = vpop.eup %1962 }
 0x73a   :  { %v1434_v41 = vmul.f32 %v1963_v40, %v1961_v39 }
 0x73c   :  { %v1436_v44 = vcombine.high %v1434_v41, %v1434_v41  ;;  %v1443_v45 = vrot.slane %v1434_v41, %v2274_v42  ;;  %v1508_v46 = vpack.c.bf16 %v1434_v41, %v1434_v41 }
 0x73e   :  { %v1450_v47 = vrot.slane %v1436_v44, %v2274_v42  ;;  %v1451_v50 = vcombine.high %v1443_v45, %v1443_v45  ;;  %v1459_v51 = vrot.slane %v1443_v45, %v2274_v42  ;;  %1788 = vst.sshfl [vmem:[%s2950_s2 + $0x6] sm:$0x1 pattern:$0x73625140] %v1443_v45  ;;  %1542 = vmatmul.mubr.bf16.vlgmr.msra.gmra.mrb[28].mxu0 %v1508_v46 }
 0x73f   :  { %1583 = vmatmul.mubr.bf16.vlgmr.msra.gmra.mrb[28].mxu1 %v1508_v46 }
 0x740   :  { %v1452_v53 = vcombine.high %v1450_v47, %v1450_v47  ;;  %v1466_v6 = vrot.slane %v1450_v47, %v2274_v42  ;;  %v1473_v28 = vrot.slane %v1451_v50, %v2274_v42  ;;  %v1481_v29 = vcombine.high %v1459_v51, %v1459_v51  ;;  %1789 = vst.sshfl [vmem:[%s2950_s2 + $0xe] sm:$0x1 pattern:$0x73625140] %v1451_v50 }
 0x741   :  { %1790 = vst.sshfl [vmem:[%s2950_s2 + $0x26] sm:$0x1 pattern:$0x73625140] %v1450_v47 }
 0x742   :  { %v1480_v30 = vrot.slane %v1452_v53, %v2274_v42  ;;  %v1482_v31 = vcombine.high %v1466_v6, %v1466_v6  ;;  %v1483_v32 = vcombine.high %v1473_v28, %v1473_v28  ;;  %1495 = vst [vmem:[%s2950_s2 + $0x16] sm:$0x1] %v1481_v29  ;;  %1791 = vst.sshfl [vmem:[%s2950_s2 + $0x2e] sm:$0x1 pattern:$0x73625140] %v1452_v53 }
 0x744   :  { %v1484_v55 = vcombine.high %v1480_v30, %v1480_v30  ;;  %1496 = vst [vmem:[%s2950_s2 + $0x1e] sm:$0x1] %v1483_v32  ;;  %1499 = vst [vmem:[%s2950_s2 + $0x36] sm:$0x1] %v1482_v31 }
 0x746   :  { %1500 = vst [vmem:[%s2950_s2 + $0x3e] sm:$0x1] %v1484_v55 }
 0x811   :  { %v1543_v59 = vpop.f32.mrb[28].mxu0 }
 0x812   :  { %v1584_v60 = vpop.f32.mrb[28].mxu1  ;;  %v1591_v63 = vadd.f32 %v1543_v59, %v1504_v57  ;;  %v1545_v61 = vpop.f32.mrb[29].mxu0 }
 0x813   :  { %v1586_v5 = vpop.f32.mrb[29].mxu1  ;;  %v1592_v35 = vadd.f32 %v1545_v61, %v1505_v58  ;;  %v1547_v43 = vpop.f32.mrb[30].mxu0  ;;  %v1593_v3 = vadd.f32 %v1584_v60, %v1506_v7 }
 0x814   :  { %v1588_v62 = vpop.f32.mrb[30].mxu1  ;;  %v1794_v48 = vmul.f32 -1.442695, %v1591_v63  ;;  %v1548_v1 = vpop.f32.mrb[31].mxu0  ;;  %v1594_v2 = vadd.f32 %v1586_v5, %v1507_v52 }
 0x815   :  { %v1589_v49 = vpop.f32.mrb[31].mxu1  ;;  %v1795_v0 = vmul.f32 -1.442695, %v1592_v35 }
 0x816   :  { %1964 = vpow2.f32 %v1794_v48  ;;  %v1796_v54 = vmul.f32 -1.442695, %v1594_v2 }
 0x817   :  { %1966 = vpow2.f32 %v1795_v0 }
 0x818   :  { %1968 = vpow2.f32 %v1796_v54 }
 0x819   :  { %1970 = vtanh.f32 %v1593_v3 }
 0x820   :  { %v1965_v8 = vpop.eup %1964 }
 0x821   :  { %v1967_v9 = vpop.eup %1966  ;;  %v1598_v10 = vadd.f32 1.0, %v1965_v8 }
 0x822   :  { %v1604_v11 = vadd.f32 1.0, %v1967_v9  ;;  %v1969_v12 = vpop.eup %1968 }
 0x823   :  { %1972 = vrcp.f32 %v1598_v10  ;;  %v1971_v13 = vpop.eup %1970  ;;  %v1611_v17 = vadd.f32 1.0, %v1969_v12 }
 0x824   :  { %1974 = vrcp.f32 %v1604_v11 }
 0x825   :  { %1976 = vrcp.f32 %v1611_v17 }
 0x82d   :  { %v1973_v14 = vpop.eup %1972 }
 0x82e   :  { %v1975_v15 = vpop.eup %1974  ;;  %v1615_v16 = vmul.f32 %v1973_v14, %v1971_v13 }
 0x82f   :  { %v1614_v18 = vmul.f32 %v1975_v15, %v2875_v38  ;;  %v1977_v20 = vpop.eup %1976 }
 0x831   :  { %v1616_v19 = vadd.f32 %v1615_v16, %v1614_v18 }
 0x833   :  { %1978 = vtanh.f32 %v1616_v19  ;;  %1690 = vst [vmem:[%s2951_s3] sm:$0xff] %v1616_v19 }
 0x83d   :  { %v1979_v21 = vpop.eup %1978 }
 0x83e   :  { %v1618_v22 = vmul.f32 %v1979_v21, %v1977_v20 }
 0x840   :  { %v1620_v23 = vcombine.high %v1618_v22, %v1618_v22  ;;  %v1627_v24 = vrot.slane %v1618_v22, %v2274_v42 }
 0x842   :  { %v1634_v25 = vrot.slane %v1620_v23, %v2274_v42  ;;  %v1635_v26 = vcombine.high %v1627_v24, %v1627_v24  ;;  %v1643_v27 = vrot.slane %v1627_v24, %v2274_v42  ;;  %1797 = vst.sshfl [vmem:[%s2950_s2 + $0x7] sm:$0x1 pattern:$0x73625140] %v1627_v24 }
 0x844   :  { %v1636_v33 = vcombine.high %v1634_v25, %v1634_v25  ;;  %v1650_v34 = vrot.slane %v1634_v25, %v2274_v42  ;;  %v1657_v36 = vrot.slane %v1635_v26, %v2274_v42  ;;  %v1665_v37 = vcombine.high %v1643_v27, %v1643_v27  ;;  %1798 = vst.sshfl [vmem:[%s2950_s2 + $0xf] sm:$0x1 pattern:$0x73625140] %v1635_v26 }
 0x845   :  { %1799 = vst.sshfl [vmem:[%s2950_s2 + $0x27] sm:$0x1 pattern:$0x73625140] %v1634_v25 }
 0x846   :  { %v1664_v38 = vrot.slane %v1636_v33, %v2274_v42  ;;  %v1666_v39 = vcombine.high %v1650_v34, %v1650_v34  ;;  %v1667_v40 = vcombine.high %v1657_v36, %v1657_v36  ;;  %1679 = vst [vmem:[%s2950_s2 + $0x17] sm:$0x1] %v1665_v37  ;;  %1800 = vst.sshfl [vmem:[%s2950_s2 + $0x2f] sm:$0x1 pattern:$0x73625140] %v1636_v33 }
 0x848   :  { %v1668_v41 = vcombine.high %v1664_v38, %v1664_v38  ;;  %1680 = vst [vmem:[%s2950_s2 + $0x1f] sm:$0x1] %v1667_v40  ;;  %1683 = vst [vmem:[%s2950_s2 + $0x37] sm:$0x1] %v1666_v39 }
 0x84a   :  { %1684 = vst [vmem:[%s2950_s2 + $0x3f] sm:$0x1] %v1668_v41 }

</bundles_post_ra>
